<compile_context>
chip_gen: v7x
topology: tpu7x:2x2x1
jax: 0.10.0
libtpu: 0.0.40
codegen_flags: <defaults>
</compile_context>

<pallas_src>
import functools

import jax
import jax.numpy as jnp
import numpy as np
from jax.experimental import pallas as pl
from jax.experimental.pallas import tpu as pltpu


# ---------------------------------------------------------------------------
# Pallas kernel
# ---------------------------------------------------------------------------
def posterior_encoder_kernel(
    xlen_ref,                               # scalar-prefetch: (B,) int32 in SMEM
    x_ref, eps_ref,                         # (1, Cin+1, T) cdt (ones channel appended), (1, Cout, T) cdt
    pre_w_ref,                              # (H, Cin+1)      cdt   (bias folded in)
    in_w_ref,                               # (L, 2H, K*H+1)  cdt   (taps fused + bias column)
    rs_w_ref,                               # (L, 2H, H+1)    cdt   (bias column; last layer res half zeroed)
    proj_w_ref,                             # (2*Cout, H+1)   cdt   (bias column)
    z_ref, m_ref, logs_ref, mask_ref,       # outputs
    h_ref, skip_ref, im2col_ref,            # VMEM scratch: (H,T) f32, (H,T) f32, (K*H+1,T) cdt
    *, hidden_channels, out_channels, kernel_size, dilation_rate, n_layers, tau,
    compute_dtype,
):
    H = hidden_channels
    K = kernel_size
    Co = out_channels
    L = n_layers
    half = (K - 1) // 2
    T = x_ref.shape[-1]
    cdt = compute_dtype
    b = pl.program_id(0)

    # ---- sequence mask (single hoisted iota); (H,T) broadcast hoisted once ----------
    length = xlen_ref[b]
    t_idx = jax.lax.broadcasted_iota(jnp.int32, (1, T), 1)
    mask = (t_idx < length).astype(jnp.float32)                    # (1, T)
    mask_h = jnp.broadcast_to(mask, (H, T))                        # hoisted out of the layer loop
    ones_row = jnp.ones((1, T), cdt)

    # ---- boundary masks for every distinct nonzero tap offset (hoisted, deduped) ----
    offsets = sorted({(dilation_rate ** i) * (k - half)
                      for i in range(L) for k in range(K)})
    bmask = {off: (((t_idx + off) >= 0) & ((t_idx + off) < T)).astype(jnp.float32)
             for off in offsets if off != 0}

    # ---- pre: 1x1 conv (bias folded: x carries a constant ones channel) -------------
    h_ref[...] = jnp.dot(pre_w_ref[...], x_ref[0],
                         preferred_element_type=jnp.float32) * mask_h
    skip_ref[...] = jnp.zeros((H, T), jnp.float32)
    # constant ones row of the im2col block = bias column of the fused in_w (set once)
    im2col_ref[pl.ds(K * H, 1), :] = ones_row

    def gated_acts(i, d):
        """im2col -> fused K-tap in-conv (single MXU call) -> tanh*sigmoid gate."""
        h = h_ref[...]                                             # (H, T) f32
        for k in range(K):                                         # static taps
            off = d * (k - half)
            if off == 0:
                tap = h
            else:
                # tap[:, t] = h[:, t + off], zero outside [0, T)
                # TODO(synk): roll the bf16 copy directly once pltpu.roll on packed
                # dtypes is guaranteed; halves XLU bytes on v6e/v7x.
                tap = pltpu.roll(h, shift=(-off) % T, axis=1) * bmask[off]
            im2col_ref[pl.ds(k * H, H), :] = tap.astype(cdt)       # cdt-resident im2col
        x_in = jnp.dot(in_w_ref[i], im2col_ref[...],
                       preferred_element_type=jnp.float32)         # (2H, T) f32
        # gate in compute dtype (bf16 EUP/VPU on v6e/v7x); sigmoid via tanh -> EUP path
        xc = x_in.astype(cdt)
        acts = jnp.tanh(xc[:H]) * (0.5 * jnp.tanh(0.5 * xc[H:]) + 0.5)
        return jnp.concatenate([acts.astype(cdt), ones_row], axis=0)   # (H+1, T)

    def layer_update(i, d):
        acts_aug = gated_acts(i, d)
        rsk = jnp.dot(rs_w_ref[i], acts_aug,
                      preferred_element_type=jnp.float32)          # (2H, T) f32
        h_ref[...] = (h_ref[...] + rsk[:H]) * mask_h               # residual
        skip_ref[...] = skip_ref[...] + rsk[H:]                    # skip accumulation

    if dilation_rate == 1:
        # layer-invariant tap offsets -> real bounded loop with dynamic per-layer
        # weight indexing (small live ranges, short compiles).
        @pl.loop(0, L - 1)
        def _(i):
            layer_update(i, 1)
    else:
        # TODO(synk): for production L on v7x (64 MiB VMEM) stream per-layer weights on
        # a second "arbitrary" grid axis instead of keeping all layers resident.
        for i in range(L - 1):
            layer_update(i, dilation_rate ** i)

    # ---- last WN layer: only the skip half of the res/skip conv is live -------------
    acts_aug = gated_acts(L - 1, dilation_rate ** (L - 1))
    w_skip = rs_w_ref[L - 1][H:]                                   # (H, H+1)
    skip = (skip_ref[...] + jnp.dot(w_skip, acts_aug,
                                    preferred_element_type=jnp.float32)) * mask_h

    # ---- proj: 1x1 conv -> stats -> reparameterize -----------------------------------
    skip_aug = jnp.concatenate([skip.astype(cdt), ones_row], axis=0)   # (H+1, T)
    stats = jnp.dot(proj_w_ref[...], skip_aug,
                    preferred_element_type=jnp.float32) * mask         # (2*Co, T)
    m = stats[:Co]
    logs = stats[Co:]
    z = (m + eps_ref[0].astype(jnp.float32) * tau * jnp.exp(logs)) * mask

    z_ref[0] = z.astype(z_ref.dtype)
    m_ref[0] = m.astype(m_ref.dtype)
    logs_ref[0] = logs.astype(logs_ref.dtype)
    mask_ref[0] = mask


# ---------------------------------------------------------------------------
# VMEM budget helper (padded-tile sizes)
# ---------------------------------------------------------------------------
def _vmem_padded_bytes(shape, dtype):
    dt = np.dtype(dtype)
    packing = max(1, 4 // dt.itemsize)
    s = (1, 1) + tuple(int(d) for d in shape)
    lead = int(np.prod(s[:-2]))
    sub = -(-s[-2] // (8 * packing)) * (8 * packing)
    lane = -(-s[-1] // 128) * 128
    return lead * sub * lane * dt.itemsize


# ---------------------------------------------------------------------------
# Wrapper
# ---------------------------------------------------------------------------
def posterior_encoder(x, x_lengths, eps, params, *, hidden_channels, out_channels,
                      kernel_size, dilation_rate, n_layers, tau=1.0,
                      compute_dtype=jnp.bfloat16, out_dtype=jnp.float32):
    B, Cin, T = x.shape
    H, K, L = hidden_channels, kernel_size, n_layers
    Co = out_channels

    # lane-dense time axis (multiple of 128) -> unmasked vector stores
    T_pad = max(((T + 127) // 128) * 128, 128)
    max_off = (dilation_rate ** (L - 1)) * ((K - 1) // 2)
    assert max_off < T_pad, "tap offset exceeds padded time axis"

    # append a constant ones channel (pre-conv bias column is folded into pre_w below)
    x_aug = jnp.concatenate([x, jnp.ones((B, 1, T), x.dtype)], axis=1)
    if T_pad != T:
        x_aug = jnp.pad(x_aug, ((0, 0), (0, 0), (0, T_pad - T)))
        eps = jnp.pad(eps, ((0, 0), (0, 0), (0, T_pad - T)))
    # boundary cast: halves the big input DMA; kernel computes in compute_dtype anyway
    x_aug = x_aug.astype(compute_dtype)
    eps_c = eps.astype(compute_dtype)

    # host-side weight re-layout:
    #   * biases folded in as an extra input column (no lane-padded (.,1) tensors)
    #   * in_w (L,2H,H,K) -> (L,2H,K,H) -> (L,2H,K*H) tap-major, matching kernel im2col
    pre_w_a = jnp.concatenate([params["pre_w"], params["pre_b"]], axis=1)       # (H, Cin+1)
    in_w_f = jnp.transpose(params["in_w"], (0, 1, 3, 2)).reshape(L, 2 * H, K * H)
    in_w_a = jnp.concatenate([in_w_f, params["in_b"]], axis=2)                  # (L, 2H, K*H+1)
    rs_w_a = jnp.concatenate([params["rs_w"], params["rs_b"]], axis=2)          # (L, 2H, H+1)
    proj_w_a = jnp.concatenate([params["proj_w"], params["proj_b"]], axis=1)    # (2Co, H+1)
    pre_w_a, in_w_a, rs_w_a, proj_w_a = (a.astype(compute_dtype)
                                         for a in (pre_w_a, in_w_a, rs_w_a, proj_w_a))

    kern = functools.partial(
        posterior_encoder_kernel,
        hidden_channels=H, out_channels=Co, kernel_size=K,
        dilation_rate=dilation_rate, n_layers=L, tau=tau, compute_dtype=compute_dtype,
    )

    def weight_spec(arr):
        nd = arr.ndim
        # constant index_map across the batch grid -> single buffer (no refetch anyway)
        return pl.BlockSpec(arr.shape, lambda b, xl, _nd=nd: (0,) * _nd,
                            pipeline_mode=pl.Buffered(1))

    scratch = [
        pltpu.VMEM((H, T_pad), jnp.float32),             # h (residual stream)
        pltpu.VMEM((H, T_pad), jnp.float32),             # skip accumulator
        pltpu.VMEM((K * H + 1, T_pad), compute_dtype),   # fused im2col block (+ ones row)
    ]

    grid_spec = pltpu.PrefetchScalarGridSpec(
        num_scalar_prefetch=1,
        grid=(B,),
        in_specs=[
            pl.BlockSpec((1, Cin + 1, T_pad), lambda b, xl: (b, 0, 0)),   # x (+ones ch)
            pl.BlockSpec((1, Co, T_pad), lambda b, xl: (b, 0, 0)),        # eps
            weight_spec(pre_w_a), weight_spec(in_w_a),
            weight_spec(rs_w_a), weight_spec(proj_w_a),
        ],
        out_specs=[
            pl.BlockSpec((1, Co, T_pad), lambda b, xl: (b, 0, 0)),        # z
            pl.BlockSpec((1, Co, T_pad), lambda b, xl: (b, 0, 0)),        # m
            pl.BlockSpec((1, Co, T_pad), lambda b, xl: (b, 0, 0)),        # logs
            pl.BlockSpec((1, 1, T_pad), lambda b, xl: (b, 0, 0)),         # x_mask
        ],
        scratch_shapes=scratch,
    )

    out_shape = (
        jax.ShapeDtypeStruct((B, Co, T_pad), out_dtype),
        jax.ShapeDtypeStruct((B, Co, T_pad), out_dtype),
        jax.ShapeDtypeStruct((B, Co, T_pad), out_dtype),
        jax.ShapeDtypeStruct((B, 1, T_pad), jnp.float32),
    )

    # explicit VMEM budget: single-buffered weights + double-buffered I/O blocks +
    # scratch + temp headroom, clamped to [32 MiB, 128 MiB].
    # TODO(synk): at production T on v7x (64 MiB physical VMEM) add an inner T-chunk
    # pipeline (pltpu.emit_pipeline with a dilation halo) instead of whole-T blocks.
    wbytes = sum(_vmem_padded_bytes(a.shape, a.dtype)
                 for a in (pre_w_a, in_w_a, rs_w_a, proj_w_a))
    io_bytes = 2 * (_vmem_padded_bytes((Cin + 1, T_pad), compute_dtype)
                    + _vmem_padded_bytes((Co, T_pad), compute_dtype)
                    + 3 * _vmem_padded_bytes((Co, T_pad), out_dtype)
                    + _vmem_padded_bytes((1, T_pad), jnp.float32))
    scr_bytes = (2 * _vmem_padded_bytes((H, T_pad), jnp.float32)
                 + _vmem_padded_bytes((K * H + 1, T_pad), compute_dtype))
    tmp_bytes = 8 * _vmem_padded_bytes((2 * H, T_pad), jnp.float32)
    vmem_limit = min(max(int(1.25 * (wbytes + io_bytes + scr_bytes + tmp_bytes))
                         + (2 << 20), 32 << 20), 128 << 20)

    z, m, logs, mask = pl.pallas_call(
        kern,
        grid_spec=grid_spec,
        out_shape=out_shape,
        compiler_params=pltpu.CompilerParams(
            dimension_semantics=("parallel",),
            vmem_limit_bytes=vmem_limit),
    )(x_lengths, x_aug, eps_c, pre_w_a, in_w_a, rs_w_a, proj_w_a)

    if T_pad != T:
        z, m, logs, mask = z[..., :T], m[..., :T], logs[..., :T], mask[..., :T]
    return z, m, logs, mask


# ---------------------------------------------------------------------------
# Pure-JAX reference (for correctness check)
# ---------------------------------------------------------------------------
def reference_forward(x, x_lengths, eps, params, *, hidden_channels, out_channels,
                      kernel_size, dilation_rate, n_layers, tau=1.0):
    hi = jax.lax.Precision.HIGHEST
    B, Cin, T = x.shape
    H = hidden_channels
    mask = (jnp.arange(T)[None, :] < x_lengths[:, None]).astype(jnp.float32)[:, None, :]
    h = (jnp.einsum("oc,bct->bot", params["pre_w"], x, precision=hi)
         + params["pre_b"][None]) * mask
    output = jnp.zeros((B, H, T), jnp.float32)
    for i in range(n_layers):
        d = dilation_rate ** i
        pad = d * (kernel_size - 1) // 2
        hp = jnp.pad(h, ((0, 0), (0, 0), (pad, pad)))
        x_in = jnp.zeros((B, 2 * H, T), jnp.float32)
        for k in range(kernel_size):
            x_in = x_in + jnp.einsum("oc,bct->bot", params["in_w"][i, :, :, k],
                                     hp[:, :, k * d:k * d + T], precision=hi)
        x_in = x_in + params["in_b"][i][None]
        acts = jnp.tanh(x_in[:, :H]) * jax.nn.sigmoid(x_in[:, H:])
        rsk = (jnp.einsum("oc,bct->bot", params["rs_w"][i], acts, precision=hi)
               + params["rs_b"][i][None])
        h = (h + rsk[:, :H]) * mask
        output = output + rsk[:, H:]
    output = output * mask
    stats = (jnp.einsum("oc,bct->bot", params["proj_w"], output, precision=hi)
             + params["proj_b"][None]) * mask
    m, logs = stats[:, :out_channels], stats[:, out_channels:]
    z = (m + eps * tau * jnp.exp(logs)) * mask
    return z, m, logs, mask


# ---------------------------------------------------------------------------
# Parameter construction (effective weights; weight_norm folded in)
# ---------------------------------------------------------------------------
def make_params(key, Cin, Cout, H, K, L):
    ks = jax.random.split(key, 8)
    pre_w = 0.1 * jax.random.normal(ks[0], (H, Cin), jnp.float32)
    pre_b = 0.05 * jax.random.normal(ks[1], (H, 1), jnp.float32)
    in_w = 0.1 * jax.random.normal(ks[2], (L, 2 * H, H, K), jnp.float32)
    in_b = 0.05 * jax.random.normal(ks[3], (L, 2 * H, 1), jnp.float32)
    rs_w = 0.1 * jax.random.normal(ks[4], (L, 2 * H, H), jnp.float32)
    rs_b = 0.05 * jax.random.normal(ks[5], (L, 2 * H, 1), jnp.float32)
    # last WN layer has skip-only output (H channels): pack into skip half, zero res half
    last_sel = jnp.concatenate([jnp.zeros((H,), jnp.float32), jnp.ones((H,), jnp.float32)])
    rs_w = rs_w.at[L - 1].multiply(last_sel[:, None])
    rs_b = rs_b.at[L - 1].multiply(last_sel[:, None])
    proj_w = 0.1 * jax.random.normal(ks[6], (2 * Cout, H), jnp.float32)
    proj_b = 0.05 * jax.random.normal(ks[7], (2 * Cout, 1), jnp.float32)
    return dict(pre_w=pre_w, pre_b=pre_b, in_w=in_w, in_b=in_b,
                rs_w=rs_w, rs_b=rs_b, proj_w=proj_w, proj_b=proj_b)


# ---------------------------------------------------------------------------
# Main
# ---------------------------------------------------------------------------
if __name__ == "__main__":
    B, Cin, Cout, H, T = 2, 4, 4, 32, 16
    key = jax.random.PRNGKey(0)
    kp, kx, ke = jax.random.split(key, 3)

    x = jax.random.normal(kx, (B, Cin, T), jnp.float32)
    x_lengths = jnp.array([T, 11], dtype=jnp.int32)
    eps = jax.random.normal(ke, (B, Cout, T), jnp.float32)   # stands in for torch.randn_like

    def check(cfg, compute_dtype, out_dtype, rtol, atol):
        params = make_params(kp, Cin, Cout, H, cfg["kernel_size"], cfg["n_layers"])
        ref = reference_forward(x, x_lengths, eps, params, **cfg)
        got = jax.block_until_ready(
            posterior_encoder(x, x_lengths, eps, params,
                              compute_dtype=compute_dtype, out_dtype=out_dtype, **cfg))
        for g, r in zip(got, ref):
            np.testing.assert_allclose(np.asarray(g.astype(jnp.float32)),
                                       np.asarray(r), rtol=rtol, atol=atol)

    cfg_a = dict(hidden_channels=H, out_channels=Cout, kernel_size=5,
                 dilation_rate=1, n_layers=2, tau=1.0)
    cfg_b = dict(hidden_channels=H, out_channels=Cout, kernel_size=3,
                 dilation_rate=2, n_layers=2, tau=1.0)

    check(cfg_a, jnp.float32, jnp.float32, 5e-3, 5e-3)      # f32 path, pl.loop over layers
    check(cfg_a, jnp.bfloat16, jnp.float32, 3e-2, 3e-2)     # bf16 matmul + bf16 gate path
    check(cfg_a, jnp.bfloat16, jnp.bfloat16, 3e-2, 3e-2)    # bf16 outputs
    check(cfg_b, jnp.float32, jnp.float32, 5e-3, 5e-3)      # dilated (static-unroll) path

    print("KERNEL_OK")
</pallas_src>

<mosaic_0001>
module attributes {stable_mosaic.version = 11 : i64} {
  func.func @posterior_encoder_kernel(%arg0: i32, %arg1: memref<2xi32, #tpu.memory_space<smem>>, %arg2: memref<1x5x128xf32, #tpu.memory_space<vmem>>, %arg3: memref<1x4x128xf32, #tpu.memory_space<vmem>>, %arg4: memref<32x5xf32, #tpu.memory_space<vmem>>, %arg5: memref<2x64x161xf32, #tpu.memory_space<vmem>>, %arg6: memref<2x64x33xf32, #tpu.memory_space<vmem>>, %arg7: memref<8x33xf32, #tpu.memory_space<vmem>>, %arg8: memref<1x4x128xf32, #tpu.memory_space<vmem>>, %arg9: memref<1x4x128xf32, #tpu.memory_space<vmem>>, %arg10: memref<1x4x128xf32, #tpu.memory_space<vmem>>, %arg11: memref<1x1x128xf32, #tpu.memory_space<vmem>>, %arg12: memref<32x128xf32, #tpu.memory_space<vmem>>, %arg13: memref<32x128xf32, #tpu.memory_space<vmem>>, %arg14: memref<161x128xf32, #tpu.memory_space<vmem>>) attributes {dimension_semantics = [#tpu.dimension_semantics<parallel>], iteration_bounds = array<i64: 2>, scalar_prefetch = 1 : i64, scratch_operands = 3 : i64, tpu.core_type = #tpu.core_type<tc>, window_params = [{transform_indices = @transform_0, window_bounds = array<i64: 1, 5, 128>}, {transform_indices = @transform_1, window_bounds = array<i64: 1, 4, 128>}, {pipeline_mode = #tpu.pipeline_mode<synchronous>, transform_indices = @transform_2, window_bounds = array<i64: 32, 5>}, {pipeline_mode = #tpu.pipeline_mode<synchronous>, transform_indices = @transform_3, window_bounds = array<i64: 2, 64, 161>}, {pipeline_mode = #tpu.pipeline_mode<synchronous>, transform_indices = @transform_4, window_bounds = array<i64: 2, 64, 33>}, {pipeline_mode = #tpu.pipeline_mode<synchronous>, transform_indices = @transform_5, window_bounds = array<i64: 8, 33>}, {transform_indices = @transform_6, window_bounds = array<i64: 1, 4, 128>}, {transform_indices = @transform_7, window_bounds = array<i64: 1, 4, 128>}, {transform_indices = @transform_8, window_bounds = array<i64: 1, 4, 128>}, {transform_indices = @transform_9, window_bounds = array<i64: 1, 1, 128>}]} {
    %0 = arith.index_cast %arg0 : i32 to index
    %1 = memref.load %arg1[%0] : memref<2xi32, #tpu.memory_space<smem>>
    %2 = tpu.iota {dimensions = array<i32: 1>} : vector<1x128xi32>
    %3 = vector.broadcast %1 : i32 to vector<1x128xi32>
    %4 = arith.cmpi slt, %2, %3 : vector<1x128xi32>
    %5 = arith.extui %4 : vector<1x128xi1> to vector<1x128xi32>
    %6 = arith.sitofp %5 : vector<1x128xi32> to vector<1x128xf32>
    %7 = vector.shape_cast %6 : vector<1x128xf32> to vector<1x128xf32>
    %8 = vector.broadcast %7 : vector<1x128xf32> to vector<32x128xf32>
    %cst = arith.constant 1.000000e+00 : f32
    %9 = vector.broadcast %cst : f32 to vector<1x128xf32>
    %c-2_i32 = arith.constant -2 : i32
    %10 = vector.broadcast %c-2_i32 : i32 to vector<1x128xi32>
    %11 = arith.addi %2, %10 : vector<1x128xi32>
    %c0_i32 = arith.constant 0 : i32
    %12 = vector.broadcast %c0_i32 : i32 to vector<1x128xi32>
    %13 = arith.cmpi sge, %11, %12 : vector<1x128xi32>
    %c-2_i32_0 = arith.constant -2 : i32
    %14 = vector.broadcast %c-2_i32_0 : i32 to vector<1x128xi32>
    %15 = arith.addi %2, %14 : vector<1x128xi32>
    %c128_i32 = arith.constant 128 : i32
    %16 = vector.broadcast %c128_i32 : i32 to vector<1x128xi32>
    %17 = arith.cmpi slt, %15, %16 : vector<1x128xi32>
    %18 = arith.andi %13, %17 : vector<1x128xi1>
    %19 = arith.extui %18 : vector<1x128xi1> to vector<1x128xi32>
    %20 = arith.sitofp %19 : vector<1x128xi32> to vector<1x128xf32>
    %c-1_i32 = arith.constant -1 : i32
    %21 = vector.broadcast %c-1_i32 : i32 to vector<1x128xi32>
    %22 = arith.addi %2, %21 : vector<1x128xi32>
    %c0_i32_1 = arith.constant 0 : i32
    %23 = vector.broadcast %c0_i32_1 : i32 to vector<1x128xi32>
    %24 = arith.cmpi sge, %22, %23 : vector<1x128xi32>
    %c-1_i32_2 = arith.constant -1 : i32
    %25 = vector.broadcast %c-1_i32_2 : i32 to vector<1x128xi32>
    %26 = arith.addi %2, %25 : vector<1x128xi32>
    %c128_i32_3 = arith.constant 128 : i32
    %27 = vector.broadcast %c128_i32_3 : i32 to vector<1x128xi32>
    %28 = arith.cmpi slt, %26, %27 : vector<1x128xi32>
    %29 = arith.andi %24, %28 : vector<1x128xi1>
    %30 = arith.extui %29 : vector<1x128xi1> to vector<1x128xi32>
    %31 = arith.sitofp %30 : vector<1x128xi32> to vector<1x128xf32>
    %c1_i32 = arith.constant 1 : i32
    %32 = vector.broadcast %c1_i32 : i32 to vector<1x128xi32>
    %33 = arith.addi %2, %32 : vector<1x128xi32>
    %c0_i32_4 = arith.constant 0 : i32
    %34 = vector.broadcast %c0_i32_4 : i32 to vector<1x128xi32>
    %35 = arith.cmpi sge, %33, %34 : vector<1x128xi32>
    %c1_i32_5 = arith.constant 1 : i32
    %36 = vector.broadcast %c1_i32_5 : i32 to vector<1x128xi32>
    %37 = arith.addi %2, %36 : vector<1x128xi32>
    %c128_i32_6 = arith.constant 128 : i32
    %38 = vector.broadcast %c128_i32_6 : i32 to vector<1x128xi32>
    %39 = arith.cmpi slt, %37, %38 : vector<1x128xi32>
    %40 = arith.andi %35, %39 : vector<1x128xi1>
    %41 = arith.extui %40 : vector<1x128xi1> to vector<1x128xi32>
    %42 = arith.sitofp %41 : vector<1x128xi32> to vector<1x128xf32>
    %c2_i32 = arith.constant 2 : i32
    %43 = vector.broadcast %c2_i32 : i32 to vector<1x128xi32>
    %44 = arith.addi %2, %43 : vector<1x128xi32>
    %c0_i32_7 = arith.constant 0 : i32
    %45 = vector.broadcast %c0_i32_7 : i32 to vector<1x128xi32>
    %46 = arith.cmpi sge, %44, %45 : vector<1x128xi32>
    %c2_i32_8 = arith.constant 2 : i32
    %47 = vector.broadcast %c2_i32_8 : i32 to vector<1x128xi32>
    %48 = arith.addi %2, %47 : vector<1x128xi32>
    %c128_i32_9 = arith.constant 128 : i32
    %49 = vector.broadcast %c128_i32_9 : i32 to vector<1x128xi32>
    %50 = arith.cmpi slt, %48, %49 : vector<1x128xi32>
    %51 = arith.andi %46, %50 : vector<1x128xi1>
    %52 = arith.extui %51 : vector<1x128xi1> to vector<1x128xi32>
    %53 = arith.sitofp %52 : vector<1x128xi32> to vector<1x128xf32>
    %c0 = arith.constant 0 : index
    %c0_10 = arith.constant 0 : index
    %54 = vector.load %arg4[%c0, %c0_10] : memref<32x5xf32, #tpu.memory_space<vmem>>, vector<32x5xf32>
    %c0_11 = arith.constant 0 : index
    %c0_12 = arith.constant 0 : index
    %c0_13 = arith.constant 0 : index
    %55 = vector.load %arg2[%c0_11, %c0_12, %c0_13] : memref<1x5x128xf32, #tpu.memory_space<vmem>>, vector<1x5x128xf32>
    %56 = vector.shape_cast %55 : vector<1x5x128xf32> to vector<5x128xf32>
    %cst_14 = arith.constant dense<0.000000e+00> : vector<32x128xf32>
    %57 = tpu.matmul %54, %56, %cst_14 {dimension_numbers = #tpu.dot_dimension_numbers<[1], [0], [0], [1], [0, 0, 1, 1], [], []>} : vector<32x5xf32>, vector<5x128xf32>, vector<32x128xf32> -> vector<32x128xf32>
    %58 = arith.mulf %57, %8 : vector<32x128xf32>
    %c0_15 = arith.constant 0 : index
    %c0_16 = arith.constant 0 : index
    %59 = vector.load %arg12[%c0_15, %c0_16] : memref<32x128xf32, #tpu.memory_space<vmem>>, vector<32x128xf32>
    tpu.vector_store %arg12[%c0_15, %c0_16], %58 {strides = array<i32>} : memref<32x128xf32, #tpu.memory_space<vmem>>, vector<32x128xf32>,
    %cst_17 = arith.constant 0.000000e+00 : f32
    %60 = vector.broadcast %cst_17 : f32 to vector<32x128xf32>
    %c0_18 = arith.constant 0 : index
    %c0_19 = arith.constant 0 : index
    %61 = vector.load %arg13[%c0_18, %c0_19] : memref<32x128xf32, #tpu.memory_space<vmem>>, vector<32x128xf32>
    tpu.vector_store %arg13[%c0_18, %c0_19], %60 {strides = array<i32>} : memref<32x128xf32, #tpu.memory_space<vmem>>, vector<32x128xf32>,
    %c160 = arith.constant 160 : index
    %c0_20 = arith.constant 0 : index
    %62 = vector.load %arg14[%c160, %c0_20] : memref<161x128xf32, #tpu.memory_space<vmem>>, vector<1x128xf32>
    tpu.vector_store %arg14[%c160, %c0_20], %9 {strides = array<i32>} : memref<161x128xf32, #tpu.memory_space<vmem>>, vector<1x128xf32>,
    %c0_i32_21 = arith.constant 0 : i32
    %c1_i32_22 = arith.constant 1 : i32
    %63 = arith.muli %c0_i32_21, %c1_i32_22 : i32
    %c0_i32_23 = arith.constant 0 : i32
    %64 = arith.addi %c0_i32_23, %63 : i32
    %c0_24 = arith.constant 0 : index
    %c0_25 = arith.constant 0 : index
    %65 = vector.load %arg12[%c0_24, %c0_25] : memref<32x128xf32, #tpu.memory_space<vmem>>, vector<32x128xf32>
    %c2_i32_26 = arith.constant 2 : i32
    %66 = tpu.dynamic_rotate %65 by %c2_i32_26 dim 1 : vector<32x128xf32>, i32 -> vector<32x128xf32>
    %67 = vector.broadcast %20 : vector<1x128xf32> to vector<32x128xf32>
    %68 = arith.mulf %66, %67 : vector<32x128xf32>
    %c0_27 = arith.constant 0 : index
    %c0_28 = arith.constant 0 : index
    %69 = vector.load %arg14[%c0_27, %c0_28] : memref<161x128xf32, #tpu.memory_space<vmem>>, vector<32x128xf32>
    tpu.vector_store %arg14[%c0_27, %c0_28], %68 {strides = array<i32>} : memref<161x128xf32, #tpu.memory_space<vmem>>, vector<32x128xf32>,
    %c1_i32_29 = arith.constant 1 : i32
    %70 = tpu.dynamic_rotate %65 by %c1_i32_29 dim 1 : vector<32x128xf32>, i32 -> vector<32x128xf32>
    %71 = vector.broadcast %31 : vector<1x128xf32> to vector<32x128xf32>
    %72 = arith.mulf %70, %71 : vector<32x128xf32>
    %c32 = arith.constant 32 : index
    %c0_30 = arith.constant 0 : index
    %73 = vector.load %arg14[%c32, %c0_30] : memref<161x128xf32, #tpu.memory_space<vmem>>, vector<32x128xf32>
    tpu.vector_store %arg14[%c32, %c0_30], %72 {strides = array<i32>} : memref<161x128xf32, #tpu.memory_space<vmem>>, vector<32x128xf32>,
    %c64 = arith.constant 64 : index
    %c0_31 = arith.constant 0 : index
    %74 = vector.load %arg14[%c64, %c0_31] : memref<161x128xf32, #tpu.memory_space<vmem>>, vector<32x128xf32>
    tpu.vector_store %arg14[%c64, %c0_31], %65 {strides = array<i32>} : memref<161x128xf32, #tpu.memory_space<vmem>>, vector<32x128xf32>,
    %c127_i32 = arith.constant 127 : i32
    %75 = tpu.dynamic_rotate %65 by %c127_i32 dim 1 : vector<32x128xf32>, i32 -> vector<32x128xf32>
    %76 = vector.broadcast %42 : vector<1x128xf32> to vector<32x128xf32>
    %77 = arith.mulf %75, %76 : vector<32x128xf32>
    %c96 = arith.constant 96 : index
    %c0_32 = arith.constant 0 : index
    %78 = vector.load %arg14[%c96, %c0_32] : memref<161x128xf32, #tpu.memory_space<vmem>>, vector<32x128xf32>
    tpu.vector_store %arg14[%c96, %c0_32], %77 {strides = array<i32>} : memref<161x128xf32, #tpu.memory_space<vmem>>, vector<32x128xf32>,
    %c126_i32 = arith.constant 126 : i32
    %79 = tpu.dynamic_rotate %65 by %c126_i32 dim 1 : vector<32x128xf32>, i32 -> vector<32x128xf32>
    %80 = vector.broadcast %53 : vector<1x128xf32> to vector<32x128xf32>
    %81 = arith.mulf %79, %80 : vector<32x128xf32>
    %c128 = arith.constant 128 : index
    %c0_33 = arith.constant 0 : index
    %82 = vector.load %arg14[%c128, %c0_33] : memref<161x128xf32, #tpu.memory_space<vmem>>, vector<32x128xf32>
    tpu.vector_store %arg14[%c128, %c0_33], %81 {strides = array<i32>} : memref<161x128xf32, #tpu.memory_space<vmem>>, vector<32x128xf32>,
    %83 = arith.index_cast %64 : i32 to index
    %c0_34 = arith.constant 0 : index
    %c0_35 = arith.constant 0 : index
    %84 = vector.load %arg5[%83, %c0_34, %c0_35] : memref<2x64x161xf32, #tpu.memory_space<vmem>>, vector<1x64x161xf32>
    %85 = vector.shape_cast %84 : vector<1x64x161xf32> to vector<64x161xf32>
    %c0_36 = arith.constant 0 : index
    %c0_37 = arith.constant 0 : index
    %86 = vector.load %arg14[%c0_36, %c0_37] : memref<161x128xf32, #tpu.memory_space<vmem>>, vector<161x128xf32>
    %cst_38 = arith.constant dense<0.000000e+00> : vector<64x128xf32>
    %87 = tpu.matmul %85, %86, %cst_38 {dimension_numbers = #tpu.dot_dimension_numbers<[1], [0], [0], [1], [0, 0, 1, 1], [], []>} : vector<64x161xf32>, vector<161x128xf32>, vector<64x128xf32> -> vector<64x128xf32>
    %88 = vector.extract_strided_slice %87 {offsets = [0, 0], sizes = [32, 128], strides = [1, 1]} : vector<64x128xf32> to vector<32x128xf32>
    %89 = math.tanh %88 : vector<32x128xf32>
    %90 = vector.extract_strided_slice %87 {offsets = [32, 0], sizes = [32, 128], strides = [1, 1]} : vector<64x128xf32> to vector<32x128xf32>
    %cst_39 = arith.constant 5.000000e-01 : f32
    %91 = vector.broadcast %cst_39 : f32 to vector<32x128xf32>
    %92 = arith.mulf %91, %90 : vector<32x128xf32>
    %93 = math.tanh %92 : vector<32x128xf32>
    %cst_40 = arith.constant 5.000000e-01 : f32
    %94 = vector.broadcast %cst_40 : f32 to vector<32x128xf32>
    %95 = arith.mulf %94, %93 : vector<32x128xf32>
    %cst_41 = arith.constant 5.000000e-01 : f32
    %96 = vector.broadcast %cst_41 : f32 to vector<32x128xf32>
    %97 = arith.addf %95, %96 : vector<32x128xf32>
    %98 = arith.mulf %89, %97 : vector<32x128xf32>
    %99 = tpu.concatenate %98, %9 in 0 : vector<32x128xf32>, vector<1x128xf32> -> vector<33x128xf32>
    %100 = arith.index_cast %64 : i32 to index
    %c0_42 = arith.constant 0 : index
    %c0_43 = arith.constant 0 : index
    %101 = vector.load %arg6[%100, %c0_42, %c0_43] : memref<2x64x33xf32, #tpu.memory_space<vmem>>, vector<1x64x33xf32>
    %102 = vector.shape_cast %101 : vector<1x64x33xf32> to vector<64x33xf32>
    %cst_44 = arith.constant dense<0.000000e+00> : vector<64x128xf32>
    %103 = tpu.matmul %102, %99, %cst_44 {dimension_numbers = #tpu.dot_dimension_numbers<[1], [0], [0], [1], [0, 0, 1, 1], [], []>} : vector<64x33xf32>, vector<33x128xf32>, vector<64x128xf32> -> vector<64x128xf32>
    %c0_45 = arith.constant 0 : index
    %c0_46 = arith.constant 0 : index
    %104 = vector.load %arg12[%c0_45, %c0_46] : memref<32x128xf32, #tpu.memory_space<vmem>>, vector<32x128xf32>
    %105 = vector.extract_strided_slice %103 {offsets = [0, 0], sizes = [32, 128], strides = [1, 1]} : vector<64x128xf32> to vector<32x128xf32>
    %106 = arith.addf %104, %105 : vector<32x128xf32>
    %107 = arith.mulf %106, %8 : vector<32x128xf32>
    %c0_47 = arith.constant 0 : index
    %c0_48 = arith.constant 0 : index
    %108 = vector.load %arg12[%c0_47, %c0_48] : memref<32x128xf32, #tpu.memory_space<vmem>>, vector<32x128xf32>
    tpu.vector_store %arg12[%c0_47, %c0_48], %107 {strides = array<i32>} : memref<32x128xf32, #tpu.memory_space<vmem>>, vector<32x128xf32>,
    %c0_49 = arith.constant 0 : index
    %c0_50 = arith.constant 0 : index
    %109 = vector.load %arg13[%c0_49, %c0_50] : memref<32x128xf32, #tpu.memory_space<vmem>>, vector<32x128xf32>
    %110 = vector.extract_strided_slice %103 {offsets = [32, 0], sizes = [32, 128], strides = [1, 1]} : vector<64x128xf32> to vector<32x128xf32>
    %111 = arith.addf %109, %110 : vector<32x128xf32>
    %c0_51 = arith.constant 0 : index
    %c0_52 = arith.constant 0 : index
    %112 = vector.load %arg13[%c0_51, %c0_52] : memref<32x128xf32, #tpu.memory_space<vmem>>, vector<32x128xf32>
    tpu.vector_store %arg13[%c0_51, %c0_52], %111 {strides = array<i32>} : memref<32x128xf32, #tpu.memory_space<vmem>>, vector<32x128xf32>,
    %c1_i32_53 = arith.constant 1 : i32
    %c0_54 = arith.constant 0 : index
    %c0_55 = arith.constant 0 : index
    %113 = vector.load %arg12[%c0_54, %c0_55] : memref<32x128xf32, #tpu.memory_space<vmem>>, vector<32x128xf32>
    %c2_i32_56 = arith.constant 2 : i32
    %114 = tpu.dynamic_rotate %113 by %c2_i32_56 dim 1 : vector<32x128xf32>, i32 -> vector<32x128xf32>
    %115 = vector.broadcast %20 : vector<1x128xf32> to vector<32x128xf32>
    %116 = arith.mulf %114, %115 : vector<32x128xf32>
    %c0_57 = arith.constant 0 : index
    %c0_58 = arith.constant 0 : index
    %117 = vector.load %arg14[%c0_57, %c0_58] : memref<161x128xf32, #tpu.memory_space<vmem>>, vector<32x128xf32>
    tpu.vector_store %arg14[%c0_57, %c0_58], %116 {strides = array<i32>} : memref<161x128xf32, #tpu.memory_space<vmem>>, vector<32x128xf32>,
    %c1_i32_59 = arith.constant 1 : i32
    %118 = tpu.dynamic_rotate %113 by %c1_i32_59 dim 1 : vector<32x128xf32>, i32 -> vector<32x128xf32>
    %119 = vector.broadcast %31 : vector<1x128xf32> to vector<32x128xf32>
    %120 = arith.mulf %118, %119 : vector<32x128xf32>
    %c32_60 = arith.constant 32 : index
    %c0_61 = arith.constant 0 : index
    %121 = vector.load %arg14[%c32_60, %c0_61] : memref<161x128xf32, #tpu.memory_space<vmem>>, vector<32x128xf32>
    tpu.vector_store %arg14[%c32_60, %c0_61], %120 {strides = array<i32>} : memref<161x128xf32, #tpu.memory_space<vmem>>, vector<32x128xf32>,
    %c64_62 = arith.constant 64 : index
    %c0_63 = arith.constant 0 : index
    %122 = vector.load %arg14[%c64_62, %c0_63] : memref<161x128xf32, #tpu.memory_space<vmem>>, vector<32x128xf32>
    tpu.vector_store %arg14[%c64_62, %c0_63], %113 {strides = array<i32>} : memref<161x128xf32, #tpu.memory_space<vmem>>, vector<32x128xf32>,
    %c127_i32_64 = arith.constant 127 : i32
    %123 = tpu.dynamic_rotate %113 by %c127_i32_64 dim 1 : vector<32x128xf32>, i32 -> vector<32x128xf32>
    %124 = vector.broadcast %42 : vector<1x128xf32> to vector<32x128xf32>
    %125 = arith.mulf %123, %124 : vector<32x128xf32>
    %c96_65 = arith.constant 96 : index
    %c0_66 = arith.constant 0 : index
    %126 = vector.load %arg14[%c96_65, %c0_66] : memref<161x128xf32, #tpu.memory_space<vmem>>, vector<32x128xf32>
    tpu.vector_store %arg14[%c96_65, %c0_66], %125 {strides = array<i32>} : memref<161x128xf32, #tpu.memory_space<vmem>>, vector<32x128xf32>,
    %c126_i32_67 = arith.constant 126 : i32
    %127 = tpu.dynamic_rotate %113 by %c126_i32_67 dim 1 : vector<32x128xf32>, i32 -> vector<32x128xf32>
    %128 = vector.broadcast %53 : vector<1x128xf32> to vector<32x128xf32>
    %129 = arith.mulf %127, %128 : vector<32x128xf32>
    %c128_68 = arith.constant 128 : index
    %c0_69 = arith.constant 0 : index
    %130 = vector.load %arg14[%c128_68, %c0_69] : memref<161x128xf32, #tpu.memory_space<vmem>>, vector<32x128xf32>
    tpu.vector_store %arg14[%c128_68, %c0_69], %129 {strides = array<i32>} : memref<161x128xf32, #tpu.memory_space<vmem>>, vector<32x128xf32>,
    %c1 = arith.constant 1 : index
    %c0_70 = arith.constant 0 : index
    %c0_71 = arith.constant 0 : index
    %131 = vector.load %arg5[%c1, %c0_70, %c0_71] : memref<2x64x161xf32, #tpu.memory_space<vmem>>, vector<1x64x161xf32>
    %132 = vector.shape_cast %131 : vector<1x64x161xf32> to vector<64x161xf32>
    %c0_72 = arith.constant 0 : index
    %c0_73 = arith.constant 0 : index
    %133 = vector.load %arg14[%c0_72, %c0_73] : memref<161x128xf32, #tpu.memory_space<vmem>>, vector<161x128xf32>
    %cst_74 = arith.constant dense<0.000000e+00> : vector<64x128xf32>
    %134 = tpu.matmul %132, %133, %cst_74 {dimension_numbers = #tpu.dot_dimension_numbers<[1], [0], [0], [1], [0, 0, 1, 1], [], []>} : vector<64x161xf32>, vector<161x128xf32>, vector<64x128xf32> -> vector<64x128xf32>
    %135 = vector.extract_strided_slice %134 {offsets = [0, 0], sizes = [32, 128], strides = [1, 1]} : vector<64x128xf32> to vector<32x128xf32>
    %136 = math.tanh %135 : vector<32x128xf32>
    %137 = vector.extract_strided_slice %134 {offsets = [32, 0], sizes = [32, 128], strides = [1, 1]} : vector<64x128xf32> to vector<32x128xf32>
    %cst_75 = arith.constant 5.000000e-01 : f32
    %138 = vector.broadcast %cst_75 : f32 to vector<32x128xf32>
    %139 = arith.mulf %138, %137 : vector<32x128xf32>
    %140 = math.tanh %139 : vector<32x128xf32>
    %cst_76 = arith.constant 5.000000e-01 : f32
    %141 = vector.broadcast %cst_76 : f32 to vector<32x128xf32>
    %142 = arith.mulf %141, %140 : vector<32x128xf32>
    %cst_77 = arith.constant 5.000000e-01 : f32
    %143 = vector.broadcast %cst_77 : f32 to vector<32x128xf32>
    %144 = arith.addf %142, %143 : vector<32x128xf32>
    %145 = arith.mulf %136, %144 : vector<32x128xf32>
    %146 = tpu.concatenate %145, %9 in 0 : vector<32x128xf32>, vector<1x128xf32> -> vector<33x128xf32>
    %c1_78 = arith.constant 1 : index
    %c0_79 = arith.constant 0 : index
    %c0_80 = arith.constant 0 : index
    %147 = vector.load %arg6[%c1_78, %c0_79, %c0_80] : memref<2x64x33xf32, #tpu.memory_space<vmem>>, vector<1x64x33xf32>
    %148 = vector.shape_cast %147 : vector<1x64x33xf32> to vector<64x33xf32>
    %149 = vector.extract_strided_slice %148 {offsets = [32, 0], sizes = [32, 33], strides = [1, 1]} : vector<64x33xf32> to vector<32x33xf32>
    %c0_81 = arith.constant 0 : index
    %c0_82 = arith.constant 0 : index
    %150 = vector.load %arg13[%c0_81, %c0_82] : memref<32x128xf32, #tpu.memory_space<vmem>>, vector<32x128xf32>
    %cst_83 = arith.constant dense<0.000000e+00> : vector<32x128xf32>
    %151 = tpu.matmul %149, %146, %cst_83 {dimension_numbers = #tpu.dot_dimension_numbers<[1], [0], [0], [1], [0, 0, 1, 1], [], []>} : vector<32x33xf32>, vector<33x128xf32>, vector<32x128xf32> -> vector<32x128xf32>
    %152 = arith.addf %150, %151 : vector<32x128xf32>
    %153 = arith.mulf %152, %8 : vector<32x128xf32>
    %154 = tpu.concatenate %153, %9 in 0 : vector<32x128xf32>, vector<1x128xf32> -> vector<33x128xf32>
    %c0_84 = arith.constant 0 : index
    %c0_85 = arith.constant 0 : index
    %155 = vector.load %arg7[%c0_84, %c0_85] : memref<8x33xf32, #tpu.memory_space<vmem>>, vector<8x33xf32>
    %cst_86 = arith.constant dense<0.000000e+00> : vector<8x128xf32>
    %156 = tpu.matmul %155, %154, %cst_86 {dimension_numbers = #tpu.dot_dimension_numbers<[1], [0], [0], [1], [0, 0, 1, 1], [], []>} : vector<8x33xf32>, vector<33x128xf32>, vector<8x128xf32> -> vector<8x128xf32>
    %157 = vector.broadcast %6 : vector<1x128xf32> to vector<8x128xf32>
    %158 = arith.mulf %156, %157 : vector<8x128xf32>
    %159 = vector.extract_strided_slice %158 {offsets = [0, 0], sizes = [4, 128], strides = [1, 1]} : vector<8x128xf32> to vector<4x128xf32>
    %160 = vector.extract_strided_slice %158 {offsets = [4, 0], sizes = [4, 128], strides = [1, 1]} : vector<8x128xf32> to vector<4x128xf32>
    %c0_87 = arith.constant 0 : index
    %c0_88 = arith.constant 0 : index
    %c0_89 = arith.constant 0 : index
    %161 = vector.load %arg3[%c0_87, %c0_88, %c0_89] : memref<1x4x128xf32, #tpu.memory_space<vmem>>, vector<1x4x128xf32>
    %162 = vector.shape_cast %161 : vector<1x4x128xf32> to vector<4x128xf32>
    %cst_90 = arith.constant 1.000000e+00 : f32
    %163 = vector.broadcast %cst_90 : f32 to vector<4x128xf32>
    %164 = arith.mulf %162, %163 : vector<4x128xf32>
    %165 = math.exp %160 : vector<4x128xf32>
    %166 = arith.mulf %164, %165 : vector<4x128xf32>
    %167 = arith.addf %159, %166 : vector<4x128xf32>
    %168 = vector.broadcast %6 : vector<1x128xf32> to vector<4x128xf32>
    %169 = arith.mulf %167, %168 : vector<4x128xf32>
    %c0_91 = arith.constant 0 : index
    %c0_92 = arith.constant 0 : index
    %c0_93 = arith.constant 0 : index
    %170 = vector.load %arg8[%c0_91, %c0_92, %c0_93] : memref<1x4x128xf32, #tpu.memory_space<vmem>>, vector<1x4x128xf32>
    %171 = vector.shape_cast %170 : vector<1x4x128xf32> to vector<4x128xf32>
    %172 = vector.shape_cast %169 : vector<4x128xf32> to vector<1x4x128xf32>
    tpu.vector_store %arg8[%c0_91, %c0_92, %c0_93], %172 {strides = array<i32>} : memref<1x4x128xf32, #tpu.memory_space<vmem>>, vector<1x4x128xf32>,
    %c0_94 = arith.constant 0 : index
    %c0_95 = arith.constant 0 : index
    %c0_96 = arith.constant 0 : index
    %173 = vector.load %arg9[%c0_94, %c0_95, %c0_96] : memref<1x4x128xf32, #tpu.memory_space<vmem>>, vector<1x4x128xf32>
    %174 = vector.shape_cast %173 : vector<1x4x128xf32> to vector<4x128xf32>
    %175 = vector.shape_cast %159 : vector<4x128xf32> to vector<1x4x128xf32>
    tpu.vector_store %arg9[%c0_94, %c0_95, %c0_96], %175 {strides = array<i32>} : memref<1x4x128xf32, #tpu.memory_space<vmem>>, vector<1x4x128xf32>,
    %c0_97 = arith.constant 0 : index
    %c0_98 = arith.constant 0 : index
    %c0_99 = arith.constant 0 : index
    %176 = vector.load %arg10[%c0_97, %c0_98, %c0_99] : memref<1x4x128xf32, #tpu.memory_space<vmem>>, vector<1x4x128xf32>
    %177 = vector.shape_cast %176 : vector<1x4x128xf32> to vector<4x128xf32>
    %178 = vector.shape_cast %160 : vector<4x128xf32> to vector<1x4x128xf32>
    tpu.vector_store %arg10[%c0_97, %c0_98, %c0_99], %178 {strides = array<i32>} : memref<1x4x128xf32, #tpu.memory_space<vmem>>, vector<1x4x128xf32>,
    %c0_100 = arith.constant 0 : index
    %c0_101 = arith.constant 0 : index
    %c0_102 = arith.constant 0 : index
    %179 = vector.load %arg11[%c0_100, %c0_101, %c0_102] : memref<1x1x128xf32, #tpu.memory_space<vmem>>, vector<1x1x128xf32>
    %180 = vector.shape_cast %179 : vector<1x1x128xf32> to vector<1x128xf32>
    %181 = vector.shape_cast %6 : vector<1x128xf32> to vector<1x1x128xf32>
    tpu.vector_store %arg11[%c0_100, %c0_101, %c0_102], %181 {strides = array<i32>} : memref<1x1x128xf32, #tpu.memory_space<vmem>>, vector<1x1x128xf32>,
    return
  }
  func.func @transform_0(%arg0: i32, %arg1: memref<2xi32, #tpu.memory_space<smem>>) -> (i32, i32, i32) {
    %c0_i32 = arith.constant 0 : i32
    %c0_i32_0 = arith.constant 0 : i32
    %c0_i32_1 = arith.constant 0 : i32
    return %arg0, %c0_i32, %c0_i32_0 : i32, i32, i32
  }
  func.func @transform_1(%arg0: i32, %arg1: memref<2xi32, #tpu.memory_space<smem>>) -> (i32, i32, i32) {
    %c0_i32 = arith.constant 0 : i32
    %c0_i32_0 = arith.constant 0 : i32
    %c0_i32_1 = arith.constant 0 : i32
    return %arg0, %c0_i32, %c0_i32_0 : i32, i32, i32
  }
  func.func @transform_2(%arg0: i32, %arg1: memref<2xi32, #tpu.memory_space<smem>>) -> (i32, i32) {
    %c0_i32 = arith.constant 0 : i32
    %c0_i32_0 = arith.constant 0 : i32
    %c0_i32_1 = arith.constant 0 : i32
    return %c0_i32, %c0_i32_0 : i32, i32
  }
  func.func @transform_3(%arg0: i32, %arg1: memref<2xi32, #tpu.memory_space<smem>>) -> (i32, i32, i32) {
    %c0_i32 = arith.constant 0 : i32
    %c0_i32_0 = arith.constant 0 : i32
    %c0_i32_1 = arith.constant 0 : i32
    %c0_i32_2 = arith.constant 0 : i32
    return %c0_i32, %c0_i32_0, %c0_i32_1 : i32, i32, i32
  }
  func.func @transform_4(%arg0: i32, %arg1: memref<2xi32, #tpu.memory_space<smem>>) -> (i32, i32, i32) {
    %c0_i32 = arith.constant 0 : i32
    %c0_i32_0 = arith.constant 0 : i32
    %c0_i32_1 = arith.constant 0 : i32
    %c0_i32_2 = arith.constant 0 : i32
    return %c0_i32, %c0_i32_0, %c0_i32_1 : i32, i32, i32
  }
  func.func @transform_5(%arg0: i32, %arg1: memref<2xi32, #tpu.memory_space<smem>>) -> (i32, i32) {
    %c0_i32 = arith.constant 0 : i32
    %c0_i32_0 = arith.constant 0 : i32
    %c0_i32_1 = arith.constant 0 : i32
    return %c0_i32, %c0_i32_0 : i32, i32
  }
  func.func @transform_6(%arg0: i32, %arg1: memref<2xi32, #tpu.memory_space<smem>>) -> (i32, i32, i32) {
    %c0_i32 = arith.constant 0 : i32
    %c0_i32_0 = arith.constant 0 : i32
    %c0_i32_1 = arith.constant 0 : i32
    return %arg0, %c0_i32, %c0_i32_0 : i32, i32, i32
  }
  func.func @transform_7(%arg0: i32, %arg1: memref<2xi32, #tpu.memory_space<smem>>) -> (i32, i32, i32) {
    %c0_i32 = arith.constant 0 : i32
    %c0_i32_0 = arith.constant 0 : i32
    %c0_i32_1 = arith.constant 0 : i32
    return %arg0, %c0_i32, %c0_i32_0 : i32, i32, i32
  }
  func.func @transform_8(%arg0: i32, %arg1: memref<2xi32, #tpu.memory_space<smem>>) -> (i32, i32, i32) {
    %c0_i32 = arith.constant 0 : i32
    %c0_i32_0 = arith.constant 0 : i32
    %c0_i32_1 = arith.constant 0 : i32
    return %arg0, %c0_i32, %c0_i32_0 : i32, i32, i32
  }
  func.func @transform_9(%arg0: i32, %arg1: memref<2xi32, #tpu.memory_space<smem>>) -> (i32, i32, i32) {
    %c0_i32 = arith.constant 0 : i32
    %c0_i32_0 = arith.constant 0 : i32
    %c0_i32_1 = arith.constant 0 : i32
    return %arg0, %c0_i32, %c0_i32_0 : i32, i32, i32
  }
}

</mosaic_0001>

<bundles_post_ra>
// kernel: tpu_custom_call.1
= control target key start
LH: loop header
LB: loop body
LE: loop exit
PB: predicated region body
PF: predicated region fallthrough
CT: control target
= control target key end

     0   :  { %s2870_s0 = inlined_call_operand.vmem [shape: s32[2], index: 0, kind: input, shape index: {}]   ;;  %s2871_s1 = inlined_call_operand.vmem [shape: f32[2,5,128], index: 1, kind: input, shape index: {}]   ;;  %s2872_s2 = inlined_call_operand.vmem [shape: f32[2,4,128], index: 2, kind: input, shape index: {}]   ;;  %s2873_s3 = inlined_call_operand.vmem [shape: f32[32,5], index: 3, kind: input, shape index: {}]   ;;  %s2874_s4 = inlined_call_operand.vmem [shape: f32[2,64,161], index: 4, kind: input, shape index: {}]   ;;  %s2875_s5 = inlined_call_operand.vmem [shape: f32[2,64,33], index: 5, kind: input, shape index: {}]   ;;  %s2876_s6 = inlined_call_operand.vmem [shape: f32[8,33], index: 6, kind: input, shape index: {}]   ;;  %s2877_s7 = inlined_call_operand.hbm [shape: f32[2,4,128], index: 7, kind: output, shape index: {0}]   ;;  %s2878_s8 = inlined_call_operand.hbm [shape: f32[2,4,128], index: 8, kind: output, shape index: {1}]   ;;  %s2879_s9 = inlined_call_operand.hbm [shape: f32[2,4,128], index: 9, kind: output, shape index: {2}]   ;;  %s2880_s10 = inlined_call_operand.hbm [shape: f32[2,1,128], index: 10, kind: output, shape index: {3}]  }
   0x1   :  { %2884 = sst [smem:[#allocation18_spill]] %s2871_s1  ;;  %s16_s15 = sshll.u32 %s2870_s0, 4  ;;  %s17_s15 = int_to_ptr.vmem [resolvable:$true] %s16_s15 }
   0x2   :  { %2885 = sst [smem:[#allocation19_spill]] %s2873_s3  ;;  %s2017_s16 = scalar_lea.vmem %s17_s15, 16 }
   0x3   :  { %2886 = sst [smem:[#allocation20_spill]] %s2874_s4  ;;  %p2018_p0 = scmp.ne.s32.totalorder %s17_s15, %s2017_s16 }
   0x4   :  { %2887 = sst [smem:[#allocation21_spill]] %s2875_s5  ;;  %p2022_p1 = scmp.lt.s32.totalorder %s17_s15, %s17_s15 }
   0x5   :  { %p2023_p2 = scmp.lt.s32.totalorder %s2017_s16, %s2017_s16 }
   0x7   :  { %p2024_p3 = por %p2023_p2, %p2022_p1 }
   0x9   :  { %p2025_p4 = pnand %p2024_p3, %p2018_p0 }
   0xb   :  { %2028 = shalt.err (!%p2025_p4)  }
   0xc   :  { %s2187_s17 = smov [#allocation6]  }
   0xd   :  { %19 = dma.vmem_to_smem %s17_s15, 16, %s2187_s17, [#allocation5] }
   0xe   :  { %2157 = dma.done.wait [#allocation5], 16 }
   0xf   :  { %2158 = vsyncadd [#allocation5], 4294967280 }
  0x10   :  { %21 = sfence }
  0x11   :  { %22 = vsyncpa [#allocation8], 0 }
  0x12   :  { %24 = vsyncpa [#allocation8 + $0x1], 0 }
  0x13   :  { %25 = vsyncpa [#allocation10], 0 }
  0x14   :  { %27 = vsyncpa [#allocation10 + $0x1], 0 }
  0x15   :  { %28 = vsyncpa [#allocation13], 0 }
  0x16   :  { %30 = vsyncpa [#allocation13 + $0x1], 0  ;;  %s2258_s0 = smov 0   ;;  %s2260_s18 = smov 0  }
  0x17   :  { %s2262_s19 = smov 0   ;;  %s2264_s20 = smov 0  }
  0x18 LB: > { %s2279_s21 = sadd.s32 4294967295, %s2185_s20   ;;  %s2881_s22 = sadd.s32 4294967294, %s2185_s20   ;;  %s2185_s20 = sphi %s2264_s20, %s2899_s20   ;;  %s2181_s19 = sphi %s2262_s19, %s2898_s19   ;;  %s2177_s18 = sphi %s2260_s18, %s2897_s18   ;;  %s2173_s0 = sphi %s2258_s0, %s2896_s0  }
  0x19   : > { %s2283_s23 = sadd.s32 1, %s2185_s20   ;;  %s179_s24 = sadd.s32 1, %s2181_s19 }
  0x1a   : > { %s176_s25 = ssub.s32 %s2185_s20, %s2283_s23  ;;  %p189_p5 = scmp.ne.s32.totalorder %s2181_s19, %s2177_s18 }
  0x1b   : > { %p177_p6 = scmp.eq.s32.totalorder %s176_s25, 0  ;;  %p190_p7 = scmp.eq.s32.totalorder %s2279_s21, 1 }
  0x1c   : > { %p195_p8 = scmp.ne.s32.totalorder %s2177_s18, %s2173_s0  ;;  %p196_p9 = scmp.eq.s32.totalorder %s2881_s22, 1 }
  0x1d   : > { %s2296_s26 = scalar_select %p177_p6, %s2181_s19, %s179_s24  }
  0x1e   : > { %p2298_p10 = por %p190_p7, %p189_p5  ;;  %p2302_p11 = por %p196_p9, %p195_p8 }
  0x1f   : > { %p1663_p12 = scmp.ge.s32.totalorder %s2185_s20, 1  ;;  %p318_p13 = scmp.lt.s32.totalorder %s2185_s20, 3 }
  0x21   : > { %p319_p0 = pnand %p1663_p12, %p318_p13 }
  0x22   : > { %p371_p1 = scmp.lt.s32.totalorder (!%p319_p0), %s2279_s21, 1  ;;  %s2890_s3 = sld [smem:[#allocation19_spill]] (!%p319_p0)  ;;  %vm415_vm0 = vcmask (!%p319_p0), 39936   ;;  %vm428_vm1 = vcmask (!%p319_p0), 1044480   ;;  %v380_v5 = vlaneseq (!%p319_p0)  ;;  %v2188_v8 = vmov (!%p319_p0), 0.0|0.0  }
  0x23   : > { %322 = sbr.rel (%p319_p0) target bundleno = 1842 (0x732), region = 44  ;;  %s2891_s1 = sld [smem:[#allocation18_spill]] (!%p319_p0)  ;;  %1834 = vmatprep.subr.bf16.mxu1 (!%p319_p0), %v2188_v8  ;;  %v2189_v9 = vmov (!%p319_p0), 0.0   ;;  %v2194_v19 = vmov (!%p319_p0), 1.0   ;;  %vm639_vm3 = vcmask (!%p319_p0), 269312   ;;  %vm664_vm8 = vcmask (!%p319_p0), 1040384  }
  0x24   : > { %s379_s13 = sld [smem:[#allocation6 + %s2279_s21]] (!%p319_p0)  ;;  %v2329_v6 = vand.u32 (!%p319_p0), 127, %v380_v5  ;;  %s2191_s14 = smov (!%p319_p0), 1   ;;  %529 = vst [vmem:[#allocation4 + $0xa0] sm:$0x1] (!%p319_p0), %v2194_v19  ;;  %vm2195_vm9 = vmmov (!%p319_p0), 0  }
  0x25   : > { %s2882_s16 = smov (!%p319_p0), 126   ;;  %s2892_s4 = sld [smem:[#allocation20_spill]] (!%p319_p0) }
  0x26   : > { %v386_v21 = vadd.s32 (!%p319_p0), 4294967294, %v2329_v6  ;;  %v392_v24 = vadd.s32 (!%p319_p0), 4294967295, %v2329_v6  ;;  %v398_v45 = vadd.s32 (!%p319_p0), 1, %v2329_v6  ;;  %v404_v53 = vadd.s32 (!%p319_p0), 2, %v2329_v6  ;;  %s2893_s5 = sld [smem:[#allocation21_spill]] (!%p319_p0)  ;;  %s2894_s25 = smov (!%p319_p0), 126  }
  0x27   : > { %s1739_s17 = sshll.u32 (!%p319_p0), %s2279_s21, 4  ;;  %s2196_s29 = smov (!%p319_p0), [#allocation12]  }
  0x28   : > { %v410_v0 = vld [vmem:[%s2890_s3] sm:$0xff] (!%p319_p0)  ;;  %v411_v2 = vld [vmem:[%s2890_s3 + $0x8] sm:$0xff] (!%p319_p0)  ;;  %v412_v3 = vld [vmem:[%s2890_s3 + $0x10] sm:$0xff] (!%p319_p0)  ;;  %vm387_vm4 = vcmp.ge.s32.totalorder (!%p319_p0), %v386_v21, 0  ;;  %vm393_vm5 = vcmp.ge.s32.totalorder (!%p319_p0), %v392_v24, 0  ;;  %vm400_vm6 = vcmp.lt.s32.totalorder (!%p319_p0), %v398_v45, 128 }
  0x29   : > { %1777 = vmatprep.mubr.msk.f32.mxu0 (!%p319_p0), %vm415_vm0, %v410_v0  ;;  %v413_v4 = vld [vmem:[%s2890_s3 + $0x18] sm:$0xff] (!%p319_p0)  ;;  %v2387_v23 = vsel (!%p319_p0), %vm387_vm4, 1.0, %v2189_v9  ;;  %v2395_v34 = vsel (!%p319_p0), %vm393_vm5, 1.0, %v2189_v9  ;;  %v2409_v50 = vsel (!%p319_p0), %vm400_vm6, 1.0, %v2189_v9  ;;  %vm406_vm7 = vcmp.lt.s32.totalorder (!%p319_p0), %v404_v53, 128  ;;  %s2033_s30 = sshll.u32 (!%p319_p0), %s2196_s29, 4  ;;  %s2034_s30 = int_to_ptr.vmem [resolvable:$false] %s2033_s30 }
  0x2a   : > { %s2313_s11 = scalar_select %p371_p1, %s2279_s21, 1  ;;  %v382_v7 = vstv %s379_s13  ;;  %v2421_v61 = vsel %vm406_vm7, 1.0, %v2189_v9 }
  0x2b   : > { %vm383_vm2 = vcmp.lt.s32.totalorder %v2329_v6, %v382_v7  ;;  %v603_v20 = vld [vmem:[%s2892_s4 + $0x8] sm:$0xff]  ;;  %v638_v7 = vld [vmem:[#allocation4 + $0xa0] sm:$0x1]  ;;  %v609_v21 = vld [vmem:[%s2892_s4 + $0x38] sm:$0xff] }
  0x2c   : > { %s1667_s12 = sshll.u32 %s2313_s11, 3  ;;  %v2334_v10 = vsel %vm383_vm2, 1.0, %v2189_v9  ;;  %1680 = vmatprep.mubr.msk.f32.mxu1 %vm639_vm3, %v603_v20  ;;  %v606_v20 = vld [vmem:[%s2892_s4 + $0x20] sm:$0xff]  ;;  %v611_v24 = vld [vmem:[%s2892_s4 + $0x48] sm:$0xff] }
  0x2d   : > { %s374_s15 = scalar_lea.vmem %s2891_s1, %s1667_s12  ;;  %s2190_s12 = smov 2  }
  0x2e   : > { %v414_v1 = vld [vmem:[%s374_s15] sm:$0x1f]  ;;  %s2192_s15 = smov 127   ;;  %s2035_s1 = scalar_lea.vmem %s2034_s30, 32 }
  0x2f   : > { %1775 = vmatprep.subr.msk.mxu0 %vm428_vm1, %v414_v1 }
  0x30   : > { %1776 = vmatpush3.msk.msra.mxu0 %vm428_vm1, %v414_v1 }
  0x31   : > { %1778 = vmatmul.mubr.msk.f32.vlgmr.msra.gmra.mrb[0].mxu0 %vm415_vm0, %v411_v2 }
  0x32   : > { %1780 = vmatprep.mubr.msk.f32.mxu0 %vm415_vm0, %v412_v3 }
  0x35   : > { %1781 = vmatmul.mubr.msk.f32.gmra.mrb[2].mxu0 %vm415_vm0, %v413_v4 }
 0x104   : > { %v1779_v11 = vpop.f32.mrb[0].mxu0 }
 0x105   : > { %v498_v12 = vpop.f32.mrb[1].mxu0  ;;  %v2345_v17 = vmul.f32 %v1779_v11, %v2334_v10  ;;  %v602_v11 = vld [vmem:[%s2892_s4] sm:$0xff] }
 0x106   : > { %v2337_v13 = vmul.f32 %v2334_v10, %v498_v12  ;;  %v605_v12 = vld [vmem:[%s2892_s4 + $0x18] sm:$0xff] }
 0x108   : > { %534 = vrot.lane.b32.xlu0 %v2337_v13, %s2190_s12  ;;  %v1782_v14 = vpop.f32.mrb[2].mxu0  ;;  %v1847_v48 = vpack.c.bf16 %v2345_v17, %v2337_v13 }
 0x109   : > { %v2342_v15 = vmul.f32 %v1782_v14, %v2334_v10  ;;  %v508_v16 = vpop.f32.mrb[3].mxu0  ;;  %v604_v14 = vld [vmem:[%s2892_s4 + $0x10] sm:$0xff] }
 0x10a   : > { %v2352_v18 = vmul.f32 %v2334_v10, %v508_v16  ;;  %v607_v16 = vld [vmem:[%s2892_s4 + $0x28] sm:$0xff] }
 0x10b   : > { %540 = vrot.lane.b32.xlu1 %v2342_v15, %s2190_s12 }
 0x10c   : > { %536 = vrot.lane.b32.xlu0 %v2345_v17, %s2190_s12  ;;  %v1850_v54 = vpack.c.bf16 %v2342_v15, %v2352_v18 }
 0x10f   : > { %538 = vrot.lane.b32.xlu1 %v2352_v18, %s2190_s12 }
 0x110   : > { %550 = vrot.lane.b32.xlu0 %v2337_v13, %s2191_s14 }
 0x113   : > { %552 = vrot.lane.b32.xlu1 %v2345_v17, %s2191_s14 }
 0x114   : > { %554 = vrot.lane.b32.xlu0 %v2352_v18, %s2191_s14 }
 0x117   : > { %556 = vrot.lane.b32.xlu1 %v2342_v15, %s2191_s14 }
 0x118   : > { %570 = vrot.lane.b32.xlu0 %v2337_v13, %s2192_s15 }
 0x11b   : > { %572 = vrot.lane.b32.xlu1 %v2345_v17, %s2192_s15 }
 0x11c   : > { %574 = vrot.lane.b32.xlu0 %v2352_v18, %s2192_s15 }
 0x11f   : > { %576 = vrot.lane.b32.xlu1 %v2342_v15, %s2192_s15 }
 0x120   : > { %586 = vrot.lane.b32.xlu0 %v2337_v13, %s2882_s16 }
 0x123   : > { %588 = vrot.lane.b32.xlu1 %v2345_v17, %s2882_s16 }
 0x124   : > { %590 = vrot.lane.b32.xlu0 %v2352_v18, %s2882_s16 }
 0x127   : > { %592 = vrot.lane.b32.xlu1 %v2342_v15, %s2882_s16  ;;  %s2717_s16 = scalar_lea.hbm %s2880_s10, %s1739_s17 }
 0x17a   : > { %v535_v22 = vpop.permute.xlu0 %534 }
 0x17b   : > { %v542_v27 = vmul.f32 %v2387_v23, %v535_v22  ;;  %v608_v22 = vld [vmem:[%s2892_s4 + $0x30] sm:$0xff] }
 0x17d   : > { %v541_v25 = vpop.permute.xlu1 %540 }
 0x17e   : > { %v537_v26 = vpop.permute.xlu0 %536  ;;  %v545_v31 = vmul.f32 %v2387_v23, %v541_v25  ;;  %v610_v25 = vld [vmem:[%s2892_s4 + $0x40] sm:$0xff] }
 0x17f   : > { %v543_v28 = vmul.f32 %v2387_v23, %v537_v26  ;;  %v613_v26 = vld [vmem:[%s2892_s4 + $0x58] sm:$0xff] }
 0x181   : > { %v539_v29 = vpop.permute.xlu1 %538  ;;  %v1835_v30 = vpack.c.bf16 %v543_v28, %v542_v27  ;;  %v612_v27 = vld [vmem:[%s2892_s4 + $0x50] sm:$0xff]  ;;  %v615_v28 = vld [vmem:[%s2892_s4 + $0x68] sm:$0xff] }
 0x182   : > { %v544_v32 = vmul.f32 %v2387_v23, %v539_v29  ;;  %v551_v33 = vpop.permute.xlu0 %550  ;;  %v614_v29 = vld [vmem:[%s2892_s4 + $0x60] sm:$0xff] }
 0x183   : > { %1836 = vmatpush1.bf16.msra.mxu1 %v1835_v30  ;;  %v558_v37 = vmul.f32 %v2395_v34, %v551_v33  ;;  %v617_v30 = vld [vmem:[%s2892_s4 + $0x78] sm:$0xff] }
 0x184   : > { %1837 = vmatprep.subr.bf16.mxu1 %v2188_v8  ;;  %v1838_v35 = vpack.c.bf16 %v545_v31, %v544_v32  ;;  %v616_v31 = vld [vmem:[%s2892_s4 + $0x70] sm:$0xff]  ;;  %v797_v32 = vld [vmem:[%s2893_s5] sm:$0xff] }
 0x185   : > { %v553_v36 = vpop.permute.xlu1 %552  ;;  %1793 = vmatprep.mubr.msk.f32.mxu0 %vm639_vm3, %v797_v32 }
 0x186   : > { %v559_v38 = vmul.f32 %v2395_v34, %v553_v36  ;;  %v555_v39 = vpop.permute.xlu0 %554 }
 0x187   : > { %1839 = vmatpush1.bf16.msra.mxu1 %v1838_v35  ;;  %v560_v42 = vmul.f32 %v2395_v34, %v555_v39 }
 0x188   : > { %1840 = vmatprep.subr.bf16.mxu1 %v2188_v8  ;;  %v1841_v40 = vpack.c.bf16 %v559_v38, %v558_v37 }
 0x189   : > { %v557_v41 = vpop.permute.xlu1 %556 }
 0x18a   : > { %v561_v43 = vmul.f32 %v2395_v34, %v557_v41  ;;  %v571_v47 = vpop.permute.xlu0 %570 }
 0x18b   : > { %1842 = vmatpush1.bf16.msra.mxu1 %v1841_v40  ;;  %v578_v55 = vmul.f32 %v2409_v50, %v571_v47 }
 0x18c   : > { %1843 = vmatprep.subr.bf16.mxu1 %v2188_v8  ;;  %v1844_v44 = vpack.c.bf16 %v561_v43, %v560_v42 }
 0x18d   : > { %v573_v46 = vpop.permute.xlu1 %572 }
 0x18e   : > { %v575_v51 = vpop.permute.xlu0 %574  ;;  %v579_v52 = vmul.f32 %v2409_v50, %v573_v46 }
 0x18f   : > { %1845 = vmatpush1.bf16.msra.mxu1 %v1844_v44  ;;  %v580_v60 = vmul.f32 %v2409_v50, %v575_v51 }
 0x190   : > { %1846 = vmatprep.subr.bf16.mxu1 %v2188_v8  ;;  %v1853_v58 = vpack.c.bf16 %v579_v52, %v578_v55 }
 0x191   : > { %v577_v49 = vpop.permute.xlu1 %576 }
 0x192   : > { %v581_v57 = vmul.f32 %v2409_v50, %v577_v49  ;;  %v587_v59 = vpop.permute.xlu0 %586 }
 0x193   : > { %1848 = vmatpush1.bf16.msra.mxu1 %v1847_v48  ;;  %v594_v1 = vmul.f32 %v2421_v61, %v587_v59 }
 0x194   : > { %1849 = vmatprep.subr.bf16.mxu1 %v2188_v8  ;;  %v1856_v63 = vpack.c.bf16 %v581_v57, %v580_v60 }
 0x195   : > { %v589_v56 = vpop.permute.xlu1 %588 }
 0x196   : > { %v595_v62 = vmul.f32 %v2421_v61, %v589_v56  ;;  %v591_v2 = vpop.permute.xlu0 %590 }
 0x197   : > { %1851 = vmatpush1.bf16.msra.mxu1 %v1850_v54  ;;  %v596_v5 = vmul.f32 %v2421_v61, %v591_v2 }
 0x198   : > { %1852 = vmatprep.subr.bf16.mxu1 %v2188_v8  ;;  %v1859_v4 = vpack.c.bf16 %v595_v62, %v594_v1 }
 0x199   : > { %v593_v0 = vpop.permute.xlu1 %592 }
 0x19a   : > { %v597_v3 = vmul.f32 %v2421_v61, %v593_v0 }
 0x19b   : > { %1854 = vmatpush1.bf16.msra.mxu1 %v1853_v58 }
 0x19c   : > { %1855 = vmatprep.subr.bf16.mxu1 %v2188_v8  ;;  %v1862_v6 = vpack.c.bf16 %v597_v3, %v596_v5 }
 0x19f   : > { %1857 = vmatpush1.bf16.msra.mxu1 %v1856_v63 }
 0x1a0   : > { %1858 = vmatprep.subr.bf16.mxu1 %v2188_v8 }
 0x1a3   : > { %1860 = vmatpush1.bf16.msra.mxu1 %v1859_v4 }
 0x1a4   : > { %1861 = vmatprep.subr.bf16.mxu1 %v2188_v8 }
 0x1a7   : > { %1863 = vmatpush1.bf16.msra.mxu1 %v1862_v6 }
 0x1a8   : > { %708 = vmatprep.subr.mxu1 %v2189_v9 }
 0x1ab   : > { %1679 = vmatpush1.msk.msra.mxu1 %vm664_vm8, %v638_v7 }
 0x1ac   : > { %733 = vmatmul.mubr.f32.vlgmr.msra.gmra.mrb[0].mxu1 %v602_v11 }
 0x1ad   : > { %1681 = vmatprep.mubr.msk.f32.mxu1 %vm639_vm3, %v605_v12 }
 0x1b0   : > { %738 = vmatmul.mubr.f32.gmra.mrb[2].mxu1 %v604_v14 }
 0x1b1   : > { %1682 = vmatprep.mubr.msk.f32.mxu1 %vm639_vm3, %v607_v16 }
 0x1b4   : > { %743 = vmatmul.mubr.f32.gmra.mrb[4].mxu1 %v606_v20 }
 0x1b5   : > { %1683 = vmatprep.mubr.msk.f32.mxu1 %vm639_vm3, %v609_v21 }
 0x1b8   : > { %748 = vmatmul.mubr.f32.gmra.mrb[6].mxu1 %v608_v22  ;;  %v798_v22 = vld [vmem:[%s2893_s5 + $0x8] sm:$0xff] }
 0x1b9   : > { %1684 = vmatprep.mubr.msk.f32.mxu1 %vm639_vm3, %v611_v24  ;;  %v799_v24 = vld [vmem:[%s2893_s5 + $0x10] sm:$0xff] }
 0x1bc   : > { %753 = vmatmul.mubr.f32.gmra.mrb[8].mxu1 %v610_v25  ;;  %v800_v25 = vld [vmem:[%s2893_s5 + $0x18] sm:$0xff] }
 0x1bd   : > { %1685 = vmatprep.mubr.msk.f32.mxu1 %vm639_vm3, %v613_v26 }
 0x1c0   : > { %758 = vmatmul.mubr.f32.gmra.mrb[10].mxu1 %v612_v27 }
 0x1c1   : > { %1686 = vmatprep.mubr.msk.f32.mxu1 %vm639_vm3, %v615_v28 }
 0x1c4   : > { %763 = vmatmul.mubr.f32.gmra.mrb[12].mxu1 %v614_v29 }
 0x1c5   : > { %1687 = vmatprep.mubr.msk.f32.mxu1 %vm639_vm3, %v617_v30 }
 0x1c8   : > { %768 = vmatmul.mubr.f32.gmra.mrb[14].mxu1 %v616_v31 }
 0x27f   : > { %v734_v33 = vpop.f32.mrb[0].mxu1 }
 0x280   : > { %v736_v35 = vpop.f32.mrb[1].mxu1 }
 0x283   : > { %v739_v36 = vpop.f32.mrb[2].mxu1 }
 0x284   : > { %v741_v37 = vpop.f32.mrb[3].mxu1 }
 0x287   : > { %v744_v38 = vpop.f32.mrb[4].mxu1 }
 0x288   : > { %v746_v39 = vpop.f32.mrb[5].mxu1 }
 0x289   : > { %v803_v39 = vld [vmem:[%s2893_s5 + $0x30] sm:$0xff] }
 0x28b   : > { %v749_v40 = vpop.f32.mrb[6].mxu1 }
 0x28c   : > { %v751_v41 = vpop.f32.mrb[7].mxu1 }
 0x28d   : > { %v1698_v41 = vld [vmem:[%s2892_s4 + $0x88] sm:$0xff] }
 0x28f   : > { %v754_v42 = vpop.f32.mrb[8].mxu1 }
 0x290   : > { %v777_v43 = vmul.f32 0.5, %v754_v42  ;;  %v756_v44 = vpop.f32.mrb[9].mxu1 }
 0x292   : > { %1983 = vtanh.f32 %v777_v43 }
 0x293   : > { %v759_v45 = vpop.f32.mrb[10].mxu1  ;;  %1985 = vtanh.f32 %v734_v33 }
 0x294   : > { %v778_v46 = vmul.f32 0.5, %v759_v45  ;;  %v761_v47 = vpop.f32.mrb[11].mxu1 }
 0x296   : > { %1987 = vtanh.f32 %v778_v46 }
 0x297   : > { %v764_v48 = vpop.f32.mrb[12].mxu1  ;;  %1989 = vtanh.f32 %v739_v36 }
 0x298   : > { %v779_v49 = vmul.f32 0.5, %v764_v48  ;;  %v766_v51 = vpop.f32.mrb[13].mxu1 }
 0x29a   : > { %1991 = vtanh.f32 %v779_v49 }
 0x29b   : > { %v769_v52 = vpop.f32.mrb[14].mxu1  ;;  %1993 = vtanh.f32 %v744_v38  ;;  %v802_v38 = vld [vmem:[%s2893_s5 + $0x28] sm:$0xff] }
 0x29c   : > { %v1984_v53 = vpop.eup %1983  ;;  %v780_v54 = vmul.f32 0.5, %v769_v52  ;;  %v771_v55 = vpop.f32.mrb[15].mxu1 }
 0x29d   : > { %v785_v56 = vmul.f32 0.5, %v1984_v53  ;;  %v1986_v57 = vpop.eup %1985 }
 0x29e   : > { %1995 = vtanh.f32 %v780_v54 }
 0x29f   : > { %v789_v58 = vadd.f32 0.5, %v785_v56  ;;  %1997 = vtanh.f32 %v749_v40  ;;  %v804_v40 = vld [vmem:[%s2893_s5 + $0x38] sm:$0xff] }
 0x2a0   : > { %v1988_v59 = vpop.eup %1987 }
 0x2a1   : > { %v786_v60 = vmul.f32 0.5, %v1988_v59  ;;  %v793_v62 = vmul.f32 %v1986_v57, %v789_v58  ;;  %v1990_v63 = vpop.eup %1989 }
 0x2a3   : > { %v790_v0 = vadd.f32 0.5, %v786_v60 }
 0x2a4   : > { %v1992_v1 = vpop.eup %1991 }
 0x2a5   : > { %v787_v2 = vmul.f32 0.5, %v1992_v1  ;;  %v794_v3 = vmul.f32 %v1990_v63, %v790_v0  ;;  %v1994_v4 = vpop.eup %1993 }
 0x2a7   : > { %v791_v5 = vadd.f32 0.5, %v787_v2  ;;  %v1864_v6 = vpack.c.bf16 %v794_v3, %v793_v62 }
 0x2a8   : > { %v1996_v7 = vpop.eup %1995 }
 0x2a9   : > { %v788_v11 = vmul.f32 0.5, %v1996_v7  ;;  %1865 = vmatprep.subr.bf16.mxu0 %v1864_v6  ;;  %v795_v12 = vmul.f32 %v1994_v4, %v791_v5  ;;  %v1998_v16 = vpop.eup %1997 }
 0x2aa   : > { %1867 = vmatpush3.bf16.msra.mxu0 %v1864_v6 }
 0x2ab   : > { %v792_v14 = vadd.f32 0.5, %v788_v11 }
 0x2ad   : > { %v796_v20 = vmul.f32 %v1998_v16, %v792_v14 }
 0x2af   : > { %v1868_v21 = vpack.c.bf16 %v796_v20, %v795_v12 }
 0x2b1   : > { %1869 = vmatprep.subr.bf16.mxu0 %v1868_v21 }
 0x2b2   : > { %1871 = vmatpush3.bf16.msra.mxu0 %v1868_v21 }
 0x2b3   : > { %1791 = vmatprep.subr.msk.mxu0 %vm664_vm8, %v2194_v19 }
 0x2b6   : > { %1792 = vmatpush3.msk.msra.mxu0 %vm664_vm8, %v2194_v19 }
 0x2b7   : > { %1794 = vmatmul.mubr.msk.f32.vlgmr.msra.gmra.mrb[4].mxu0 %vm639_vm3, %v798_v22  ;;  %1872 = vmatprep.subr.bf16.mxu0 %v2188_v8 }
 0x2b8   : > { %1796 = vmatprep.mubr.msk.f32.mxu0 %vm639_vm3, %v799_v24 }
 0x2bb   : > { %1797 = vmatmul.mubr.msk.f32.gmra.mrb[6].mxu0 %vm639_vm3, %v800_v25 }
 0x38a   : > { %v1795_v26 = vpop.f32.mrb[4].mxu0 }
 0x38b   : > { %v942_v27 = vadd.f32 %v1795_v26, %v2345_v17  ;;  %v898_v28 = vpop.f32.mrb[5].mxu0  ;;  %v1074_v26 = vld [vmem:[#allocation4 + $0xa0] sm:$0x1] }
 0x38c   : > { %v941_v29 = vadd.f32 %v898_v28, %v2337_v13  ;;  %v1699_v28 = vld [vmem:[%s2892_s4 + $0x90] sm:$0xff] }
 0x38d   : > { %v2508_v30 = vmul.f32 %v2334_v10, %v942_v27  ;;  %v1700_v27 = vld [vmem:[%s2892_s4 + $0x98] sm:$0xff] }
 0x38e   : > { %v2511_v31 = vmul.f32 %v2334_v10, %v941_v29  ;;  %v1798_v32 = vpop.f32.mrb[6].mxu0  ;;  %v1702_v29 = vld [vmem:[%s2892_s4 + $0xa8] sm:$0xff] }
 0x38f   : > { %v944_v33 = vadd.f32 %v1798_v32, %v2342_v15  ;;  %971 = vrot.lane.b32.xlu1 %v2508_v30, %s2190_s12  ;;  %v908_v35 = vpop.f32.mrb[7].mxu0  ;;  %v1703_v32 = vld [vmem:[%s2892_s4 + $0xb0] sm:$0xff] }
 0x390   : > { %v943_v36 = vadd.f32 %v908_v35, %v2352_v18  ;;  %969 = vrot.lane.b32.xlu0 %v2511_v31, %s2190_s12  ;;  %v1885_v13 = vpack.c.bf16 %v2508_v30, %v2511_v31  ;;  %v801_v18 = vld [vmem:[%s2893_s5 + $0x20] sm:$0xff] }
 0x391   : > { %v2522_v17 = vmul.f32 %v2334_v10, %v944_v33  ;;  %1799 = vmatprep.mubr.msk.f32.mxu0 %vm639_vm3, %v801_v18  ;;  %v1706_v33 = vld [vmem:[%s2892_s4 + $0xc8] sm:$0xff]  ;;  %v1705_v35 = vld [vmem:[%s2892_s4 + $0xc0] sm:$0xff]  ;;  %v1711_v18 = vld [vmem:[%s2892_s4 + $0xf0] sm:$0xff] }
 0x392   : > { %v2525_v37 = vmul.f32 %v2334_v10, %v943_v36  ;;  %1800 = vmatmul.mubr.msk.f32.gmra.mrb[8].mxu0 %vm639_vm3, %v802_v38  ;;  %v1708_v36 = vld [vmem:[%s2892_s4 + $0xd8] sm:$0xff] }
 0x393   : > { %975 = vrot.lane.b32.xlu1 %v2522_v17, %s2190_s12  ;;  %1802 = vmatprep.mubr.msk.f32.mxu0 %vm639_vm3, %v803_v39 }
 0x394   : > { %973 = vrot.lane.b32.xlu0 %v2525_v37, %s2190_s12  ;;  %v1888_v15 = vpack.c.bf16 %v2522_v17, %v2525_v37 }
 0x396   : > { %1803 = vmatmul.mubr.msk.f32.gmra.mrb[10].mxu0 %vm639_vm3, %v804_v40 }
 0x397   : > { %987 = vrot.lane.b32.xlu1 %v2508_v30, %s2191_s14  ;;  %1714 = vmatprep.mubr.msk.f32.mxu0 %vm639_vm3, %v1698_v41 }
 0x398   : > { %985 = vrot.lane.b32.xlu0 %v2511_v31, %s2191_s14 }
 0x39b   : > { %991 = vrot.lane.b32.xlu1 %v2522_v17, %s2191_s14 }
 0x39c   : > { %989 = vrot.lane.b32.xlu0 %v2525_v37, %s2191_s14 }
 0x39f   : > { %1007 = vrot.lane.b32.xlu1 %v2508_v30, %s2192_s15 }
 0x3a0   : > { %1005 = vrot.lane.b32.xlu0 %v2511_v31, %s2192_s15 }
 0x3a3   : > { %1011 = vrot.lane.b32.xlu1 %v2522_v17, %s2192_s15 }
 0x3a4   : > { %1009 = vrot.lane.b32.xlu0 %v2525_v37, %s2192_s15  ;;  %s2709_s15 = sand.u32 1, %s2177_s18  }
 0x3a5   : > { %s370_s13 = scalar_lea.vmem [#allocation12], %s2709_s15  ;;  %s1449_s14 = scalar_lea.sflag [#allocation13], %s2709_s15 }
 0x3a6   : > { %1432 = vst [vmem:[%s370_s13] sm:$0x1] %v2334_v10  ;;  %s1500_s24 = sshll.u32 %s370_s13, 4  ;;  %s1501_s24 = int_to_ptr.vmem [resolvable:$true] %s1500_s24 }
 0x3a7   : > { %1023 = vrot.lane.b32.xlu1 %v2508_v30, %s2894_s25  ;;  %v1701_v30 = vld [vmem:[%s2892_s4 + $0xa0] sm:$0xff]  ;;  %p2036_p5 = scmp.lt.s32.totalorder %s1501_s24, %s2034_s30 }
 0x3a8   : > { %1021 = vrot.lane.b32.xlu0 %v2511_v31, %s2894_s25  ;;  %v1704_v31 = vld [vmem:[%s2892_s4 + $0xb8] sm:$0xff] }
 0x3ab   : > { %1027 = vrot.lane.b32.xlu1 %v2522_v17, %s2894_s25  ;;  %v1710_v17 = vld [vmem:[%s2892_s4 + $0xe8] sm:$0xff] }
 0x3ac   : > { %1025 = vrot.lane.b32.xlu0 %v2525_v37, %s2894_s25  ;;  %v1709_v37 = vld [vmem:[%s2892_s4 + $0xe0] sm:$0xff]  ;;  %s2029_s25 = scalar_lea.vmem %s1501_s24, 16 }
 0x3ad   : > { %p2030_p2 = scmp.ne.s32.totalorder %s1501_s24, %s2029_s25  ;;  %p2037_p6 = scmp.lt.s32.totalorder %s2035_s1, %s2029_s25 }
 0x3af   : > { %p2031_p3 = pnand %p2030_p2, %p2298_p10  ;;  %p2038_p7 = por %p2037_p6, %p2036_p5 }
 0x3b1   : > { %p2032_p4 = pneg %p2031_p3 }
 0x3b3   : > { %p2039_p8 = pnand %p2038_p7, %p2032_p4 }
 0x401   : > { %v972_v42 = vpop.permute.xlu1 %971 }
 0x402   : > { %v978_v43 = vmul.f32 %v2387_v23, %v972_v42  ;;  %v970_v44 = vpop.permute.xlu0 %969  ;;  %v1722_v42 = vld [vmem:[%s2893_s5 + $0x60] sm:$0xff] }
 0x403   : > { %v977_v45 = vmul.f32 %v2387_v23, %v970_v44  ;;  %1815 = vmatprep.mubr.msk.f32.mxu1 %vm639_vm3, %v1722_v42 }
 0x405   : > { %v976_v46 = vpop.permute.xlu1 %975  ;;  %v1873_v47 = vpack.c.bf16 %v978_v43, %v977_v45 }
 0x406   : > { %v980_v48 = vmul.f32 %v2387_v23, %v976_v46  ;;  %v974_v49 = vpop.permute.xlu0 %973 }
 0x407   : > { %v979_v51 = vmul.f32 %v2387_v23, %v974_v49  ;;  %1874 = vmatpush1.bf16.msra.mxu0 %v1873_v47 }
 0x408   : > { %1875 = vmatprep.subr.bf16.mxu0 %v2188_v8 }
 0x409   : > { %v988_v52 = vpop.permute.xlu1 %987  ;;  %v1876_v53 = vpack.c.bf16 %v980_v48, %v979_v51 }
 0x40a   : > { %v994_v54 = vmul.f32 %v2395_v34, %v988_v52  ;;  %v986_v55 = vpop.permute.xlu0 %985 }
 0x40b   : > { %v993_v56 = vmul.f32 %v2395_v34, %v986_v55  ;;  %1877 = vmatpush1.bf16.msra.mxu0 %v1876_v53 }
 0x40c   : > { %1878 = vmatprep.subr.bf16.mxu0 %v2188_v8 }
 0x40d   : > { %v992_v57 = vpop.permute.xlu1 %991  ;;  %v1879_v58 = vpack.c.bf16 %v994_v54, %v993_v56 }
 0x40e   : > { %v996_v59 = vmul.f32 %v2395_v34, %v992_v57  ;;  %v990_v60 = vpop.permute.xlu0 %989 }
 0x40f   : > { %v995_v23 = vmul.f32 %v2395_v34, %v990_v60  ;;  %1880 = vmatpush1.bf16.msra.mxu0 %v1879_v58 }
 0x410   : > { %1881 = vmatprep.subr.bf16.mxu0 %v2188_v8 }
 0x411   : > { %v1008_v62 = vpop.permute.xlu1 %1007  ;;  %v1882_v63 = vpack.c.bf16 %v996_v59, %v995_v23 }
 0x412   : > { %v1014_v0 = vmul.f32 %v2409_v50, %v1008_v62  ;;  %v1006_v1 = vpop.permute.xlu0 %1005 }
 0x413   : > { %v1013_v2 = vmul.f32 %v2409_v50, %v1006_v1  ;;  %1883 = vmatpush1.bf16.msra.mxu0 %v1882_v63 }
 0x414   : > { %1884 = vmatprep.subr.bf16.mxu0 %v2188_v8 }
 0x415   : > { %v1012_v3 = vpop.permute.xlu1 %1011 }
 0x416   : > { %v1016_v4 = vmul.f32 %v2409_v50, %v1012_v3  ;;  %v1010_v5 = vpop.permute.xlu0 %1009 }
 0x417   : > { %v1015_v6 = vmul.f32 %v2409_v50, %v1010_v5  ;;  %1886 = vmatpush1.bf16.msra.mxu0 %v1885_v13  ;;  %v1891_v50 = vpack.c.bf16 %v1014_v0, %v1013_v2  ;;  %v1707_v13 = vld [vmem:[%s2892_s4 + $0xd0] sm:$0xff] }
 0x418   : > { %1887 = vmatprep.subr.bf16.mxu0 %v2188_v8 }
 0x419   : > { %v1024_v34 = vpop.permute.xlu1 %1023  ;;  %v1894_v22 = vpack.c.bf16 %v1016_v4, %v1015_v6 }
 0x41a   : > { %v1030_v7 = vmul.f32 %v2421_v61, %v1024_v34  ;;  %v1022_v11 = vpop.permute.xlu0 %1021 }
 0x41b   : > { %v1029_v12 = vmul.f32 %v2421_v61, %v1022_v11  ;;  %1889 = vmatpush1.bf16.msra.mxu0 %v1888_v15  ;;  %v1712_v15 = vld [vmem:[%s2892_s4 + $0xf8] sm:$0xff] }
 0x41c   : > { %1890 = vmatprep.subr.bf16.mxu0 %v2188_v8 }
 0x41d   : > { %v1028_v14 = vpop.permute.xlu1 %1027  ;;  %v1897_v24 = vpack.c.bf16 %v1030_v7, %v1029_v12 }
 0x41e   : > { %v1032_v16 = vmul.f32 %v2421_v61, %v1028_v14  ;;  %v1026_v20 = vpop.permute.xlu0 %1025 }
 0x41f   : > { %v1031_v21 = vmul.f32 %v2421_v61, %v1026_v20  ;;  %1892 = vmatpush1.bf16.msra.mxu0 %v1891_v50  ;;  %v1697_v61 = vld [vmem:[%s2892_s4 + $0x80] sm:$0xff] }
 0x420   : > { %1893 = vmatprep.subr.bf16.mxu0 %v2188_v8 }
 0x421   : > { %v1900_v25 = vpack.c.bf16 %v1032_v16, %v1031_v21 }
 0x423   : > { %1895 = vmatpush1.bf16.msra.mxu0 %v1894_v22 }
 0x424   : > { %1896 = vmatprep.subr.bf16.mxu0 %v2188_v8 }
 0x427   : > { %1898 = vmatpush1.bf16.msra.mxu0 %v1897_v24 }
 0x428   : > { %1899 = vmatprep.subr.bf16.mxu0 %v2188_v8 }
 0x42b   : > { %1901 = vmatpush1.bf16.msra.mxu0 %v1900_v25 }
 0x42c   : > { %1142 = vmatprep.subr.mxu0 %v2189_v9 }
 0x42f   : > { %1713 = vmatpush1.msk.msra.mxu0 %vm664_vm8, %v1074_v26 }
 0x430   : > { %1167 = vmatmul.mubr.f32.vlgmr.msra.gmra.mrb[12].mxu0 %v1697_v61 }
 0x431   : > { %1715 = vmatprep.mubr.msk.f32.mxu0 %vm639_vm3, %v1700_v27 }
 0x434   : > { %1172 = vmatmul.mubr.f32.gmra.mrb[14].mxu0 %v1699_v28  ;;  %v1723_v28 = vld [vmem:[%s2893_s5 + $0x68] sm:$0xff] }
 0x435   : > { %1716 = vmatprep.mubr.msk.f32.mxu0 %vm639_vm3, %v1702_v29  ;;  %v1724_v29 = vld [vmem:[%s2893_s5 + $0x70] sm:$0xff] }
 0x438   : > { %1177 = vmatmul.mubr.f32.gmra.mrb[16].mxu0 %v1701_v30  ;;  %v1725_v30 = vld [vmem:[%s2893_s5 + $0x78] sm:$0xff] }
 0x439   : > { %1717 = vmatprep.mubr.msk.f32.mxu0 %vm639_vm3, %v1704_v31 }
 0x43c   : > { %1182 = vmatmul.mubr.f32.gmra.mrb[18].mxu0 %v1703_v32 }
 0x43d   : > { %1718 = vmatprep.mubr.msk.f32.mxu0 %vm639_vm3, %v1706_v33 }
 0x440   : > { %1187 = vmatmul.mubr.f32.gmra.mrb[20].mxu0 %v1705_v35 }
 0x441   : > { %1719 = vmatprep.mubr.msk.f32.mxu0 %vm639_vm3, %v1708_v36 }
 0x444   : > { %1192 = vmatmul.mubr.f32.gmra.mrb[22].mxu0 %v1707_v13 }
 0x445   : > { %1720 = vmatprep.mubr.msk.f32.mxu0 %vm639_vm3, %v1710_v17 }
 0x448   : > { %1197 = vmatmul.mubr.f32.gmra.mrb[24].mxu0 %v1709_v37 }
 0x449   : > { %1721 = vmatprep.mubr.msk.f32.mxu0 %vm639_vm3, %v1712_v15 }
 0x44c   : > { %1202 = vmatmul.mubr.f32.gmra.mrb[26].mxu0 %v1711_v18 }
 0x465   : > { %v2662_v38 = vpop.f32.mrb[8].mxu0 }
 0x466   : > { %v2664_v39 = vpop.f32.mrb[9].mxu0 }
 0x469   : > { %v2666_v40 = vpop.f32.mrb[10].mxu0 }
 0x46a   : > { %v2668_v41 = vpop.f32.mrb[11].mxu0 }
 0x503   : > { %v1168_v43 = vpop.f32.mrb[12].mxu0 }
 0x504   : > { %v1170_v44 = vpop.f32.mrb[13].mxu0 }
 0x507   : > { %v1173_v45 = vpop.f32.mrb[14].mxu0 }
 0x508   : > { %v1175_v46 = vpop.f32.mrb[15].mxu0 }
 0x50b   : > { %v1178_v47 = vpop.f32.mrb[16].mxu0 }
 0x50c   : > { %v1180_v48 = vpop.f32.mrb[17].mxu0 }
 0x50f   : > { %v1183_v49 = vpop.f32.mrb[18].mxu0 }
 0x510   : > { %v1185_v51 = vpop.f32.mrb[19].mxu0 }
 0x513   : > { %v1188_v52 = vpop.f32.mrb[20].mxu0 }
 0x514   : > { %v1211_v53 = vmul.f32 0.5, %v1188_v52  ;;  %v1190_v54 = vpop.f32.mrb[21].mxu0 }
 0x516   : > { %1999 = vtanh.f32 %v1211_v53 }
 0x517   : > { %v1193_v55 = vpop.f32.mrb[22].mxu0  ;;  %2001 = vtanh.f32 %v1168_v43 }
 0x518   : > { %v1212_v56 = vmul.f32 0.5, %v1193_v55  ;;  %v1195_v57 = vpop.f32.mrb[23].mxu0 }
 0x51a   : > { %2003 = vtanh.f32 %v1212_v56 }
 0x51b   : > { %v1198_v58 = vpop.f32.mrb[24].mxu0  ;;  %2005 = vtanh.f32 %v1173_v45 }
 0x51c   : > { %v1213_v59 = vmul.f32 0.5, %v1198_v58  ;;  %v1200_v60 = vpop.f32.mrb[25].mxu0 }
 0x51e   : > { %2007 = vtanh.f32 %v1213_v59 }
 0x51f   : > { %v1203_v23 = vpop.f32.mrb[26].mxu0  ;;  %2009 = vtanh.f32 %v1178_v47 }
 0x520   : > { %v2000_v62 = vpop.eup %1999  ;;  %v1214_v63 = vmul.f32 0.5, %v1203_v23  ;;  %v1205_v0 = vpop.f32.mrb[27].mxu0 }
 0x521   : > { %v1219_v1 = vmul.f32 0.5, %v2000_v62  ;;  %v2002_v2 = vpop.eup %2001 }
 0x522   : > { %2011 = vtanh.f32 %v1214_v63 }
 0x523   : > { %v1223_v3 = vadd.f32 0.5, %v1219_v1  ;;  %2013 = vtanh.f32 %v1183_v49 }
 0x524   : > { %v2004_v4 = vpop.eup %2003 }
 0x525   : > { %v1220_v5 = vmul.f32 0.5, %v2004_v4  ;;  %v1227_v6 = vmul.f32 %v2002_v2, %v1223_v3  ;;  %v2006_v34 = vpop.eup %2005 }
 0x527   : > { %v1224_v7 = vadd.f32 0.5, %v1220_v5 }
 0x528   : > { %v2008_v11 = vpop.eup %2007 }
 0x529   : > { %v1221_v12 = vmul.f32 0.5, %v2008_v11  ;;  %v1228_v14 = vmul.f32 %v2006_v34, %v1224_v7  ;;  %v2010_v50 = vpop.eup %2009 }
 0x52b   : > { %v1225_v16 = vadd.f32 0.5, %v1221_v12  ;;  %v1902_v20 = vpack.c.bf16 %v1228_v14, %v1227_v6 }
 0x52c   : > { %v2012_v21 = vpop.eup %2011 }
 0x52d   : > { %v1222_v22 = vmul.f32 0.5, %v2012_v21  ;;  %1903 = vmatprep.subr.bf16.mxu1 %v1902_v20  ;;  %v1229_v24 = vmul.f32 %v2010_v50, %v1225_v16  ;;  %v2014_v26 = vpop.eup %2013 }
 0x52e   : > { %1905 = vmatpush3.bf16.msra.mxu1 %v1902_v20 }
 0x52f   : > { %v1226_v25 = vadd.f32 0.5, %v1222_v22 }
 0x531   : > { %v1230_v61 = vmul.f32 %v2014_v26, %v1226_v25 }
 0x533   : > { %v1906_v27 = vpack.c.bf16 %v1230_v61, %v1229_v24 }
 0x535   : > { %1907 = vmatprep.subr.bf16.mxu1 %v1906_v27 }
 0x536   : > { %1909 = vmatpush3.bf16.msra.mxu1 %v1906_v27 }
 0x537   : > { %1813 = vmatprep.subr.msk.mxu1 %vm664_vm8, %v2194_v19 }
 0x53a   : > { %1814 = vmatpush3.msk.msra.mxu1 %vm664_vm8, %v2194_v19 }
 0x53b   : > { %1816 = vmatmul.mubr.msk.f32.vlgmr.msra.gmra.mrb[16].mxu1 %vm639_vm3, %v1723_v28  ;;  %1910 = vmatprep.subr.bf16.mxu1 %v2188_v8 }
 0x53c   : > { %1818 = vmatprep.mubr.msk.f32.mxu1 %vm639_vm3, %v1724_v29 }
 0x53f   : > { %1819 = vmatmul.mubr.msk.f32.gmra.mrb[18].mxu1 %vm639_vm3, %v1725_v30 }
 0x540   : > { %1831 = vmatprep.mubr.msk.f32.mxu1 %vm2195_vm9, %v2189_v9 }
 0x60e   : > { %v1817_v31 = vpop.f32.mrb[16].mxu1 }
 0x60f   : > { %v1338_v32 = vadd.f32 %v1817_v31, %v2662_v38  ;;  %v1318_v33 = vpop.f32.mrb[17].mxu1 }
 0x610   : > { %v1337_v35 = vadd.f32 %v1318_v33, %v2664_v39 }
 0x611   : > { %v1342_v36 = vmul.f32 %v2334_v10, %v1338_v32 }
 0x612   : > { %v1341_v13 = vmul.f32 %v2334_v10, %v1337_v35  ;;  %v1820_v17 = vpop.f32.mrb[18].mxu1 }
 0x613   : > { %v1340_v37 = vadd.f32 %v1820_v17, %v2666_v40  ;;  %v1328_v15 = vpop.f32.mrb[19].mxu1  ;;  %v1345_v40 = vld [vmem:[%s2876_s6] sm:$0xff] }
 0x614   : > { %v1911_v18 = vpack.c.bf16 %v1342_v36, %v1341_v13  ;;  %v1339_v42 = vadd.f32 %v1328_v15, %v2668_v41 }
 0x615   : > { %v1344_v43 = vmul.f32 %v2334_v10, %v1340_v37 }
 0x616   : > { %v1343_v38 = vmul.f32 %v2334_v10, %v1339_v42  ;;  %1912 = vmatpush3.bf16.msra.mxu1 %v1911_v18 }
 0x617   : > { %1913 = vmatprep.subr.bf16.mxu1 %v2188_v8 }
 0x618   : > { %v1914_v39 = vpack.c.bf16 %v1344_v43, %v1343_v38 }
 0x61a   : > { %1915 = vmatpush3.bf16.msra.mxu1 %v1914_v39 }
 0x61b   : > { %1829 = vmatprep.subr.mxu1 %v2189_v9 }
 0x61e   : > { %1830 = vmatpush3.msk.msra.mxu1 %vm664_vm8, %v2194_v19 }
 0x61f   : > { %1832 = vmatmul.mubr.msk.f32.vlgmr.msra.gmra.mrb[20].mxu1 %vm639_vm3, %v1345_v40 }
 0x620   : > { %2042 = shalt.err (!%p2039_p8)
}
 0x621   : > { %s2043_s13 = scalar_lea.hbm %s2717_s16, 16  ;;  %s2047_s22 = scalar_lea.hbm %s2880_s10, 32 }
 0x622   : > { %p2044_p9 = scmp.ne.s32.totalorder %s2717_s16, %s2043_s13  ;;  %p2048_p0 = scmp.lt.u32.totalorder %s2717_s16, %s2880_s10 }
 0x623   : > { %p2049_p1 = scmp.lt.u32.totalorder %s2047_s22, %s2043_s13  ;;  %p2051_p3 = scmp.lt.u32.totalorder %s2043_s13, %s2717_s16 }
 0x624   : > { %p2045_p12 = pnand %p2044_p9, %p2298_p10 }
 0x625   : > { %p2050_p2 = por %p2049_p1, %p2048_p0 }
 0x626   : > { %p2046_p13 = pneg %p2045_p12 }
 0x627   : > { %p2052_p4 = por %p2051_p3, %p2050_p2 }
 0x629   : > { %p2053_p5 = pnand %p2052_p4, %p2046_p13 }
 0x62b   : > { %2056 = shalt.err (!%p2053_p5)
}
 0x62c   : > { %1923 = dma.vmem_to_hbm [thread:$0]  (%p2298_p10), %s1501_s24, 16, %s2717_s16, %s1449_s14  }
 0x62d   : > { %s2738_s1 = sshll.u32 %s2709_s15, 2  ;;  %s1438_s25 = sand.u32 1, %s2279_s21  }
 0x62e   : > { %s2742_s17 = sshll.u32 %s2279_s21, 6  ;;  %s357_s13 = scalar_lea.vmem [#allocation9], %s2738_s1 }
 0x62f   : > { %s1474_s12 = sshll.u32 %s357_s13, 4  ;;  %s364_s22 = scalar_lea.vmem [#allocation11], %s2738_s1  ;;  %s2755_s12 = int_to_ptr.vmem [resolvable:$true] %s1474_s12 }
 0x630   : > { %s1487_s29 = sshll.u32 %s364_s22, 4  ;;  %s2753_s14 = scalar_lea.hbm %s2878_s8, %s2742_s17  ;;  %s2763_s29 = int_to_ptr.vmem [resolvable:$true] %s1487_s29 }
 0x631   : > { %s2761_s3 = scalar_lea.hbm %s2879_s9, %s2742_s17  ;;  %s2768_s24 = scalar_lea.sflag [#allocation10], %s1438_s25 }
 0x632   : > { %s2057_s16 = scalar_lea.vmem %s2755_s12, 64  ;;  %s2197_s21 = smov [#allocation9]  }
 0x633   : > { %p2058_p6 = scmp.ne.s32.totalorder %s2755_s12, %s2057_s16  ;;  %s2061_s30 = sshll.u32 %s2197_s21, 4  ;;  %s2062_s30 = int_to_ptr.vmem [resolvable:$false] %s2061_s30 }
 0x634   : > { %s2063_s4 = scalar_lea.vmem %s2062_s30, 128  ;;  %p2064_p9 = scmp.lt.s32.totalorder %s2755_s12, %s2062_s30 }
 0x635   : > { %p2059_p7 = pnand %p2058_p6, %p2298_p10  ;;  %p2065_p12 = scmp.lt.s32.totalorder %s2063_s4, %s2057_s16 }
 0x637   : > { %p2060_p8 = pneg %p2059_p7  ;;  %p2066_p13 = por %p2065_p12, %p2064_p9 }
 0x639   : > { %p2067_p0 = pnand %p2066_p13, %p2060_p8 }
 0x6f2   : > { %v1415_v8 = vpop.f32.mrb[20].mxu1 }
 0x6f3   : > { %v2747_v9 = vmul.f32 %v2334_v10, %v1415_v8  ;;  %v1833_v19 = vpop.f32.mrb[21].mxu1 }
 0x6f5   : > { %v1421_v41 = vmul.f32 1.442695, %v2747_v9  ;;  %1430 = vst [vmem:[%s357_s13] sm:$0xf] %v2747_v9  ;;  %1431 = vst [vmem:[%s364_s22 - $0x4] sm:$0xf0] %v2747_v9 }
 0x6f6   : > { %2070 = shalt.err (!%p2067_p0)
}
 0x6f7   : > { %s2071_s25 = scalar_lea.hbm %s2753_s14, 64  ;;  %s2075_s21 = scalar_lea.hbm %s2878_s8, 128 }
 0x6f8   : > { %p2072_p1 = scmp.ne.s32.totalorder %s2753_s14, %s2071_s25  ;;  %p2076_p4 = scmp.lt.u32.totalorder %s2753_s14, %s2878_s8 }
 0x6f9   : > { %p2077_p5 = scmp.lt.u32.totalorder %s2075_s21, %s2071_s25  ;;  %p2079_p7 = scmp.lt.u32.totalorder %s2071_s25, %s2753_s14 }
 0x6fa   : > { %p2073_p2 = pnand %p2072_p1, %p2298_p10 }
 0x6fb   : > { %p2078_p6 = por %p2077_p5, %p2076_p4 }
 0x6fc   : > { %p2074_p3 = pneg %p2073_p2 }
 0x6fd   : > { %p2080_p8 = por %p2079_p7, %p2078_p6 }
 0x6ff   : > { %p2081_p9 = pnand %p2080_p8, %p2074_p3 }
 0x701   : > { %2084 = shalt.err (!%p2081_p9)
}
 0x702   : > { %1921 = dma.vmem_to_hbm [thread:$0]  (%p2298_p10), %s2755_s12, 64, %s2753_s14, %s2768_s24   ;;  %2015 = vpow2.f32 %v1421_v41 }
 0x703   : > { %s2085_s4 = scalar_lea.vmem %s2763_s29, 64  ;;  %s2198_s5 = smov [#allocation11]  }
 0x704   : > { %p2086_p12 = scmp.ne.s32.totalorder %s2763_s29, %s2085_s4  ;;  %s2089_s16 = sshll.u32 %s2198_s5, 4  ;;  %s2090_s16 = int_to_ptr.vmem [resolvable:$false] %s2089_s16 }
 0x705   : > { %s2091_s25 = scalar_lea.vmem %s2090_s16, 128  ;;  %p2092_p1 = scmp.lt.s32.totalorder %s2763_s29, %s2090_s16 }
 0x706   : > { %p2087_p13 = pnand %p2086_p12, %p2298_p10  ;;  %p2093_p2 = scmp.lt.s32.totalorder %s2091_s25, %s2085_s4 }
 0x708   : > { %p2088_p0 = pneg %p2087_p13  ;;  %p2094_p3 = por %p2093_p2, %p2092_p1 }
 0x70a   : > { %p2095_p4 = pnand %p2094_p3, %p2088_p0 }
 0x70c   : > { %2098 = shalt.err (!%p2095_p4)
}
 0x70d   : > { %s2099_s12 = scalar_lea.hbm %s2761_s3, 64  ;;  %s2103_s22 = scalar_lea.hbm %s2879_s9, 128 }
 0x70e   : > { %p2100_p5 = scmp.ne.s32.totalorder %s2761_s3, %s2099_s12  ;;  %p2104_p8 = scmp.lt.u32.totalorder %s2761_s3, %s2879_s9 }
 0x70f   : > { %p2105_p9 = scmp.lt.u32.totalorder %s2103_s22, %s2099_s12  ;;  %p2107_p13 = scmp.lt.u32.totalorder %s2099_s12, %s2761_s3 }
 0x710   : > { %p2101_p6 = pnand %p2100_p5, %p2298_p10 }
 0x711   : > { %p2106_p12 = por %p2105_p9, %p2104_p8 }
 0x712   : > { %p2102_p7 = pneg %p2101_p6 }
 0x713   : > { %p2108_p0 = por %p2107_p13, %p2106_p12 }
 0x715   : > { %p2109_p1 = pnand %p2108_p0, %p2102_p7 }
 0x717   : > { %2112 = shalt.err (!%p2109_p1)
}
 0x718   : > { %1922 = dma.vmem_to_hbm [thread:$0]  (%p2298_p10), %s2763_s29, 64, %s2761_s3, %s2768_s24   ;;  %v2016_v44 = vpop.eup %2015 }
 0x719   : > { %s1668_s4 = sshll.u32 %s2313_s11, 2  ;;  %v1424_v46 = vrot.slane %v2016_v44, 4  ;;  %s350_s12 = scalar_lea.vmem [#allocation7], %s2738_s1 }
 0x71a   : > { %s378_s25 = scalar_lea.vmem %s2872_s2, %s1668_s4  ;;  %s1461_s14 = sshll.u32 %s350_s12, 4  ;;  %s2827_s14 = int_to_ptr.vmem [resolvable:$true] %s1461_s14 }
 0x71b   : > { %v1420_v45 = vld [vmem:[%s378_s25] sm:$0xf]  ;;  %s2825_s3 = scalar_lea.hbm %s2877_s7, %s2742_s17  ;;  %s1434_s11 = scalar_lea.sflag [#allocation8], %s2709_s15 }
 0x71c   : > { %v1426_v47 = vmul.f32 %v1424_v46, %v1420_v45  ;;  %s2113_s29 = scalar_lea.vmem %s2827_s14, 64  ;;  %s2199_s1 = smov [#allocation7]  }
 0x71d   : > { %p2114_p2 = scmp.ne.s32.totalorder %s2827_s14, %s2113_s29  ;;  %s2117_s24 = sshll.u32 %s2199_s1, 4  ;;  %s2118_s24 = int_to_ptr.vmem [resolvable:$false] %s2117_s24 }
 0x71e   : > { %v1427_v48 = vadd.f32 %v1426_v47, %v2747_v9  ;;  %s2119_s21 = scalar_lea.vmem %s2118_s24, 128  ;;  %p2120_p5 = scmp.lt.s32.totalorder %s2827_s14, %s2118_s24 }
 0x71f   : > { %p2115_p3 = pnand %p2114_p2, %p2298_p10  ;;  %p2121_p6 = scmp.lt.s32.totalorder %s2119_s21, %s2113_s29 }
 0x720   : > { %v1428_v49 = vmul.f32 %v2334_v10, %v1427_v48 }
 0x721   : > { %p2116_p4 = pneg %p2115_p3  ;;  %p2122_p7 = por %p2121_p6, %p2120_p5 }
 0x722   : > { %1429 = vst [vmem:[%s350_s12] sm:$0xf] %v1428_v49 }
 0x723   : > { %p2123_p8 = pnand %p2122_p7, %p2116_p4 }
 0x725   : > { %2126 = shalt.err (!%p2123_p8)
}
 0x726   : > { %s2127_s15 = scalar_lea.hbm %s2825_s3, 64  ;;  %s2131_s4 = scalar_lea.hbm %s2877_s7, 128 }
 0x727   : > { %p2128_p9 = scmp.ne.s32.totalorder %s2825_s3, %s2127_s15  ;;  %p2132_p0 = scmp.lt.u32.totalorder %s2825_s3, %s2877_s7 }
 0x728   : > { %p2133_p1 = scmp.lt.u32.totalorder %s2131_s4, %s2127_s15  ;;  %p2135_p3 = scmp.lt.u32.totalorder %s2127_s15, %s2825_s3 }
 0x729   : > { %p2129_p12 = pnand %p2128_p9, %p2298_p10 }
 0x72a   : > { %p2134_p2 = por %p2133_p1, %p2132_p0 }
 0x72b   : > { %p2130_p13 = pneg %p2129_p12 }
 0x72c   : > { %p2136_p4 = por %p2135_p3, %p2134_p2 }
 0x72e   : > { %p2137_p5 = pnand %p2136_p4, %p2130_p13 }
 0x730   : > { %2140 = shalt.err (!%p2137_p5)
}
 0x731   : > { %1920 = dma.vmem_to_hbm [thread:$0]  (%p2298_p10), %s2827_s14, 64, %s2825_s3, %s1434_s11  }
 0x732 PF: > { %p1941_p6 = scmp.ge.s32.totalorder %s2185_s20, 2  ;;  %s1512_s25 = sand.u32 1, %s2173_s0  }
 0x733   : > { %s1513_s12 = scalar_lea.sflag [#allocation8], %s1512_s25 }
 0x734   : > { %p1929_p7 = pnand %p1941_p6, %p2302_p11 }
 0x736   : > { %2160 = dma.done.wait (!%p1929_p7), %s1513_s12, 64  }
 0x737   : > { %2162 = vsyncadd (!%p1929_p7), %s1513_s12, 4294967232  ;;  %s2895_s13 = sadd.s32 4294967294, %s2185_s20  }
 0x738   : > { %s1521_s22 = sand.u32 1, %s2895_s13  }
 0x739   : > { %s1522_s29 = scalar_lea.sflag [#allocation10], %s1521_s22 }
 0x73a   : > { %2164 = dma.done.wait (!%p1929_p7), %s1522_s29, 128  }
 0x73b   : > { %2166 = vsyncadd (!%p1929_p7), %s1522_s29, 4294967168  ;;  %s1540_s27 = scalar_lea.sflag [#allocation13], %s1512_s25 }
 0x73c   : > { %2168 = dma.done.wait (!%p1929_p7), %s1540_s27, 16  }
 0x73d   : > { %2170 = vsyncadd (!%p1929_p7), %s1540_s27, 4294967280  ;;  %p33_p10 = scmp.ge.s32.totalorder %s2283_s23, 4   ;;  %s2896_s0 = smov %s2177_s18 }
 0x73e   : > { %s2897_s18 = smov %s2181_s19  ;;  %s2898_s19 = smov %s2296_s26 }
 0x73f   : > { %s2899_s20 = smov %s2283_s23  ;;  %35 = sbr.rel (!%p33_p10) target bundleno = 24 (0x18), region = 133 }
 0x746   :  { %1544 = vsyncpa [#allocation8], 1 }
 0x747   :  { %1546 = vsyncpa [#allocation8 + $0x1], 1 }
 0x748   :  { %1547 = vsyncpa [#allocation10], 1 }
 0x749   :  { %1549 = vsyncpa [#allocation10 + $0x1], 1 }
 0x74a   :  { %1550 = vsyncpa [#allocation13], 1 }
 0x74b   :  { %1552 = vsyncpa [#allocation13 + $0x1], 1 }

</bundles_post_ra>
